<compile_context>
chip_gen: v7x
topology: tpu7x:2x2x1
jax: 0.10.0
libtpu: 0.0.40
codegen_flags: <defaults>
</compile_context>

<pallas_src>
import functools

import jax
import jax.numpy as jnp
from jax import lax
from jax.experimental import pallas as pl


# ------------------------------ Pallas kernel ------------------------------ #

def _seq_encoder_kernel(*refs, B, S, n_t, n_fc_rest, n_stages, vocab_p1):
    """Fused SeqEncoder forward: all SwissArmyLayer stages + seq-sums."""
    it = iter(refs)
    t_ref = next(it)                      # (B*S, t_seq_bits) f32
    idx_ref = next(it)                    # (B*S, 1) i32
    stages = []
    for s in range(n_stages):
        stages.append(dict(
            t_w=[next(it) for _ in range(n_t)],
            t_b=[next(it) for _ in range(n_t)],
            w_t=next(it),                 # (t_out, hidden_s)
            emb_proj=next(it),            # (vocab+1, hidden_s) = emb @ W_e
            w_in=(next(it) if s > 0 else None),   # (hidden_{s-1}, hidden_s)
            b0=next(it),                  # (1, hidden_s)
            fc_w=[next(it) for _ in range(n_fc_rest)],
            fc_b=[next(it) for _ in range(n_fc_rest)],
        ))
    out_ref = next(it)                    # (B, hidden_last) f32

    rows = B * S

    # Built once, shared by all stages.  The folded embedding tables keep an
    # all-zero row at padding_idx, so nn.Embedding(padding_idx=...) semantics
    # are preserved (and out-of-range ids also map to zero).
    ids = idx_ref[...]                                            # (rows, 1)
    col = lax.broadcasted_iota(jnp.int32, (rows, vocab_p1), 1)
    onehot = (ids == col).astype(jnp.float32)                     # (rows, V+1)

    t_in = t_ref[...]
    x = None                              # summed encoder state, (B, H_prev)

    for s, st in enumerate(stages):
        # t_layers chain (stage-specific weights, shared raw t_seq input).
        t = t_in
        for w, b in zip(st['t_w'], st['t_b']):
            t = jnp.maximum(
                jnp.dot(t, w[...], preferred_element_type=jnp.float32) + b[...],
                0.0)

        # First fc layer as a split matmul over the concat blocks:
        #   relu([t | e | in_emb] @ W0 + b0)
        #     = relu(t@W_t + onehot@(emb@W_e) + bcast_S(x)@W_in + b0)
        h = jnp.dot(t, st['w_t'][...], preferred_element_type=jnp.float32)
        h = h + jnp.dot(onehot, st['emb_proj'][...],
                        preferred_element_type=jnp.float32)
        if st['w_in'] is not None:
            xw = jnp.dot(x, st['w_in'][...],
                         preferred_element_type=jnp.float32)      # (B, hidden)
            # Broadcast each batch row over its S sequence rows in VMEM
            # (layout-preserving sublane broadcast; never touches HBM).
            h = h + jnp.broadcast_to(
                xw[:, None, :], (B, S, xw.shape[-1])).reshape(rows,
                                                              xw.shape[-1])
        h = jnp.maximum(h + st['b0'][...], 0.0)

        # Remaining fc layers of the stage.
        for w, b in zip(st['fc_w'], st['fc_b']):
            h = jnp.maximum(
                jnp.dot(h, w[...], preferred_element_type=jnp.float32) + b[...],
                0.0)

        # SeqEncoder sum over the sequence dim: sublane reduce, no MXU pass.
        x = jnp.sum(h.reshape(B, S, h.shape[-1]), axis=1)         # (B, hidden)

    out_ref[...] = x


# --------------------------- Parameter preparation -------------------------- #

def _linear_params(key, fan_in, fan_out):
    kw, kb = jax.random.split(key)
    # Stored transposed (in, out) so the kernel does x @ W.
    w = jax.random.normal(kw, (fan_in, fan_out), jnp.float32) * 0.1
    b = jax.random.normal(kb, (1, fan_out), jnp.float32) * 0.1
    return w, b


def make_swiss_layer_params(key, t_seq_bits, t_layer_dim, t_num_layers,
                            fc_layers, vocab_len, emb_dim, input_emb_dim):
    keys = jax.random.split(key, t_num_layers + fc_layers + 1)
    ki = 0

    t_ws, t_bs = [], []
    if t_num_layers > 0:
        w, b = _linear_params(keys[ki], t_seq_bits, t_layer_dim); ki += 1
        t_ws.append(w); t_bs.append(b)
        for _ in range(t_num_layers - 1):
            w, b = _linear_params(keys[ki], t_layer_dim, t_layer_dim); ki += 1
            t_ws.append(w); t_bs.append(b)
        t_out = t_layer_dim
    else:
        t_out = t_seq_bits

    hidden = t_out + emb_dim + (input_emb_dim or 0)

    # Embedding table with padding_idx = vocab_len zeroed.
    emb = jax.random.normal(keys[ki], (vocab_len + 1, emb_dim), jnp.float32) * 0.1
    emb = emb.at[vocab_len].set(0.0)
    ki += 1

    fc_ws, fc_bs = [], []
    for _ in range(fc_layers):
        w, b = _linear_params(keys[ki], hidden, hidden); ki += 1
        fc_ws.append(w); fc_bs.append(b)

    return dict(t_w=t_ws, t_b=t_bs, emb=emb, fc_w=fc_ws, fc_b=fc_bs)


def make_seq_encoder_params(key, t_seq_bits, t_layer_dim, t_num_layers,
                            fc_layers, encoder_layers, vocab_len, emb_dim):
    keys = jax.random.split(key, encoder_layers + 1)
    params = {'initial': make_swiss_layer_params(
        keys[0], t_seq_bits, t_layer_dim, t_num_layers, fc_layers,
        vocab_len, emb_dim, input_emb_dim=None)}

    input_emb_dim = emb_dim + (t_seq_bits if t_num_layers == 0 else t_layer_dim)
    enc = []
    for i in range(encoder_layers):
        enc.append(make_swiss_layer_params(
            keys[i + 1], t_seq_bits, t_layer_dim, t_num_layers, fc_layers,
            vocab_len, emb_dim, input_emb_dim=input_emb_dim))
        input_emb_dim += emb_dim + (t_seq_bits if t_num_layers == 0
                                    else t_layer_dim)
    params['encoder'] = enc
    return params


def fold_params(params, t_seq_bits):
    """One-time weight folding for the fused kernel.

    Slices each stage's first fc weight into its concat blocks and folds the
    embedding table through its W_e block (emb_proj = emb @ W_e).  Pure
    parameter transform -- done once, outside the kernel.
    """
    stage_params = [params['initial']] + list(params['encoder'])
    n_t = len(stage_params[0]['t_w'])
    t_out = stage_params[0]['t_w'][-1].shape[1] if n_t > 0 else t_seq_bits
    emb_dim = stage_params[0]['emb'].shape[1]

    folded = []
    for s, p in enumerate(stage_params):
        # fc_layers == 0 (pure concat output) is not supported by the
        # split-matmul fast path.
        assert len(p['fc_w']) >= 1, "fused kernel requires fc_layers >= 1"
        w0 = p['fc_w'][0]                             # (hidden_s, hidden_s)
        folded.append(dict(
            t_w=list(p['t_w']), t_b=list(p['t_b']),
            w_t=w0[:t_out],
            emb_proj=jnp.dot(p['emb'], w0[t_out:t_out + emb_dim],
                             precision=lax.Precision.HIGHEST),
            w_in=(w0[t_out + emb_dim:] if s > 0 else None),
            b0=p['fc_b'][0],
            fc_w=list(p['fc_w'][1:]), fc_b=list(p['fc_b'][1:]),
        ))
    return folded


# ------------------------------- Forward pass ------------------------------- #

def seq_encoder_forward(folded_stages, t_seq, one_hot_idx):
    """t_seq: (B, S, t_seq_bits) f32; one_hot_idx: (B, S) int32 -> (B, H)."""
    B, S, F = t_seq.shape
    rows = B * S
    t2d = t_seq.reshape(rows, F).astype(jnp.float32)
    # Indices are needed as a vector operand of the one-hot compare, so they
    # live in VMEM (loaded once for the whole fused forward).
    idx2d = one_hot_idx.reshape(rows, 1).astype(jnp.int32)

    n_stages = len(folded_stages)
    n_t = len(folded_stages[0]['t_w'])
    n_fc_rest = len(folded_stages[0]['fc_w'])
    vocab_p1 = folded_stages[0]['emb_proj'].shape[0]
    last = folded_stages[-1]
    hidden_last = (last['fc_w'][-1].shape[1] if n_fc_rest > 0
                   else last['b0'].shape[1])

    args = [t2d, idx2d]
    for s, st in enumerate(folded_stages):
        args += st['t_w'] + st['t_b']
        args.append(st['w_t'])
        args.append(st['emb_proj'])
        if s > 0:
            args.append(st['w_in'])
        args.append(st['b0'])
        args += st['fc_w'] + st['fc_b']

    kernel = functools.partial(
        _seq_encoder_kernel, B=B, S=S, n_t=n_t, n_fc_rest=n_fc_rest,
        n_stages=n_stages, vocab_p1=vocab_p1)

    # Gridless: every operand (a few hundred KB total) is resident in VMEM for
    # the whole fused forward; no per-stage launches or HBM round trips.
    return pl.pallas_call(
        kernel,
        out_shape=jax.ShapeDtypeStruct((B, hidden_last), jnp.float32),
    )(*args)


# ----------------------------- Pure-JAX reference --------------------------- #

def _ref_stage(t2d, idx2d, p, in_emb, B, S):
    t = t2d
    for w, b in zip(p['t_w'], p['t_b']):
        t = jnp.maximum(t @ w + b, 0.0)
    e = p['emb'][idx2d[:, 0]]
    parts = [t, e] + ([in_emb] if in_emb is not None else [])
    x = jnp.concatenate(parts, axis=-1)
    for w, b in zip(p['fc_w'], p['fc_b']):
        x = jnp.maximum(x @ w + b, 0.0)
    return x.reshape(B, S, -1).sum(axis=1)


def seq_encoder_reference(params, t_seq, one_hot_idx):
    B, S, F = t_seq.shape
    t2d = t_seq.reshape(B * S, F).astype(jnp.float32)
    idx2d = one_hot_idx.reshape(B * S, 1).astype(jnp.int32)
    x = _ref_stage(t2d, idx2d, params['initial'], None, B, S)
    for p in params['encoder']:
        in_emb = jnp.broadcast_to(
            x[:, None, :], (B, S, x.shape[-1])).reshape(B * S, -1)
        x = _ref_stage(t2d, idx2d, p, in_emb, B, S)
    return x


# ----------------------------------- Main ----------------------------------- #

if __name__ == "__main__":
    # Module hyper-parameters (small, consistent with the forward pass).
    t_seq_bits = 16
    t_seq_len = 8
    t_layer_dim = 32
    t_num_layers = 1
    fc_layers = 2
    encoder_layers = 2
    one_hot_vocab_len = 10
    one_hot_embedding_dim = 16
    B = 2

    key = jax.random.PRNGKey(0)
    k_par, k_t, k_idx = jax.random.split(key, 3)

    params = make_seq_encoder_params(
        k_par, t_seq_bits, t_layer_dim, t_num_layers, fc_layers,
        encoder_layers, one_hot_vocab_len, one_hot_embedding_dim)
    folded = fold_params(params, t_seq_bits)

    t_seq = jax.random.normal(k_t, (B, t_seq_len, t_seq_bits), jnp.float32)
    one_hot_idx = jax.random.randint(
        k_idx, (B, t_seq_len), 0, one_hot_vocab_len + 1, jnp.int32)

    out = seq_encoder_forward(folded, t_seq, one_hot_idx)
    out = jax.block_until_ready(out)

    ref = jax.block_until_ready(
        seq_encoder_reference(params, t_seq, one_hot_idx))
    assert out.shape == ref.shape, (out.shape, ref.shape)
    assert jnp.allclose(out, ref, rtol=1e-4, atol=1e-4), \
        float(jnp.max(jnp.abs(out - ref)))

    print("KERNEL_OK")
</pallas_src>

<mosaic_0001>
module attributes {stable_mosaic.version = 11 : i64} {
  func.func @_seq_encoder_kernel(%arg0: memref<16x16xf32, #tpu.memory_space<vmem>>, %arg1: memref<16x1xi32, #tpu.memory_space<vmem>>, %arg2: memref<16x32xf32, #tpu.memory_space<vmem>>, %arg3: memref<1x32xf32, #tpu.memory_space<vmem>>, %arg4: memref<32x48xf32, #tpu.memory_space<vmem>>, %arg5: memref<11x48xf32, #tpu.memory_space<vmem>>, %arg6: memref<1x48xf32, #tpu.memory_space<vmem>>, %arg7: memref<48x48xf32, #tpu.memory_space<vmem>>, %arg8: memref<1x48xf32, #tpu.memory_space<vmem>>, %arg9: memref<16x32xf32, #tpu.memory_space<vmem>>, %arg10: memref<1x32xf32, #tpu.memory_space<vmem>>, %arg11: memref<32x96xf32, #tpu.memory_space<vmem>>, %arg12: memref<11x96xf32, #tpu.memory_space<vmem>>, %arg13: memref<48x96xf32, #tpu.memory_space<vmem>>, %arg14: memref<1x96xf32, #tpu.memory_space<vmem>>, %arg15: memref<96x96xf32, #tpu.memory_space<vmem>>, %arg16: memref<1x96xf32, #tpu.memory_space<vmem>>, %arg17: memref<16x32xf32, #tpu.memory_space<vmem>>, %arg18: memref<1x32xf32, #tpu.memory_space<vmem>>, %arg19: memref<32x144xf32, #tpu.memory_space<vmem>>, %arg20: memref<11x144xf32, #tpu.memory_space<vmem>>, %arg21: memref<96x144xf32, #tpu.memory_space<vmem>>, %arg22: memref<1x144xf32, #tpu.memory_space<vmem>>, %arg23: memref<144x144xf32, #tpu.memory_space<vmem>>, %arg24: memref<1x144xf32, #tpu.memory_space<vmem>>, %arg25: memref<2x144xf32, #tpu.memory_space<vmem>>) attributes {dimension_semantics = [], scalar_prefetch = 0 : i64, scratch_operands = 0 : i64, tpu.core_type = #tpu.core_type<tc>} {
    %c0 = arith.constant 0 : index
    %c0_0 = arith.constant 0 : index
    %0 = vector.load %arg1[%c0, %c0_0] : memref<16x1xi32, #tpu.memory_space<vmem>>, vector<16x1xi32>
    %1 = tpu.iota {dimensions = array<i32: 1>} : vector<16x11xi32>
    %2 = vector.broadcast %0 : vector<16x1xi32> to vector<16x11xi32>
    %3 = arith.cmpi eq, %2, %1 : vector<16x11xi32>
    %4 = arith.extui %3 : vector<16x11xi1> to vector<16x11xi32>
    %5 = arith.sitofp %4 : vector<16x11xi32> to vector<16x11xf32>
    %c0_1 = arith.constant 0 : index
    %c0_2 = arith.constant 0 : index
    %6 = vector.load %arg0[%c0_1, %c0_2] : memref<16x16xf32, #tpu.memory_space<vmem>>, vector<16x16xf32>
    %c0_3 = arith.constant 0 : index
    %c0_4 = arith.constant 0 : index
    %7 = vector.load %arg2[%c0_3, %c0_4] : memref<16x32xf32, #tpu.memory_space<vmem>>, vector<16x32xf32>
    %cst = arith.constant dense<0.000000e+00> : vector<16x32xf32>
    %8 = tpu.matmul %6, %7, %cst {dimension_numbers = #tpu.dot_dimension_numbers<[1], [0], [0], [1], [0, 0, 1, 1], [], []>} : vector<16x16xf32>, vector<16x32xf32>, vector<16x32xf32> -> vector<16x32xf32>
    %c0_5 = arith.constant 0 : index
    %c0_6 = arith.constant 0 : index
    %9 = vector.load %arg3[%c0_5, %c0_6] : memref<1x32xf32, #tpu.memory_space<vmem>>, vector<1x32xf32>
    %10 = vector.broadcast %9 : vector<1x32xf32> to vector<16x32xf32>
    %11 = arith.addf %8, %10 : vector<16x32xf32>
    %cst_7 = arith.constant 0.000000e+00 : f32
    %12 = vector.broadcast %cst_7 : f32 to vector<16x32xf32>
    %13 = arith.maximumf %11, %12 : vector<16x32xf32>
    %c0_8 = arith.constant 0 : index
    %c0_9 = arith.constant 0 : index
    %14 = vector.load %arg4[%c0_8, %c0_9] : memref<32x48xf32, #tpu.memory_space<vmem>>, vector<32x48xf32>
    %cst_10 = arith.constant dense<0.000000e+00> : vector<16x48xf32>
    %15 = tpu.matmul %13, %14, %cst_10 {dimension_numbers = #tpu.dot_dimension_numbers<[1], [0], [0], [1], [0, 0, 1, 1], [], []>} : vector<16x32xf32>, vector<32x48xf32>, vector<16x48xf32> -> vector<16x48xf32>
    %c0_11 = arith.constant 0 : index
    %c0_12 = arith.constant 0 : index
    %16 = vector.load %arg5[%c0_11, %c0_12] : memref<11x48xf32, #tpu.memory_space<vmem>>, vector<11x48xf32>
    %cst_13 = arith.constant dense<0.000000e+00> : vector<16x48xf32>
    %17 = tpu.matmul %5, %16, %cst_13 {dimension_numbers = #tpu.dot_dimension_numbers<[1], [0], [0], [1], [0, 0, 1, 1], [], []>} : vector<16x11xf32>, vector<11x48xf32>, vector<16x48xf32> -> vector<16x48xf32>
    %18 = arith.addf %15, %17 : vector<16x48xf32>
    %c0_14 = arith.constant 0 : index
    %c0_15 = arith.constant 0 : index
    %19 = vector.load %arg6[%c0_14, %c0_15] : memref<1x48xf32, #tpu.memory_space<vmem>>, vector<1x48xf32>
    %20 = vector.broadcast %19 : vector<1x48xf32> to vector<16x48xf32>
    %21 = arith.addf %18, %20 : vector<16x48xf32>
    %cst_16 = arith.constant 0.000000e+00 : f32
    %22 = vector.broadcast %cst_16 : f32 to vector<16x48xf32>
    %23 = arith.maximumf %21, %22 : vector<16x48xf32>
    %c0_17 = arith.constant 0 : index
    %c0_18 = arith.constant 0 : index
    %24 = vector.load %arg7[%c0_17, %c0_18] : memref<48x48xf32, #tpu.memory_space<vmem>>, vector<48x48xf32>
    %cst_19 = arith.constant dense<0.000000e+00> : vector<16x48xf32>
    %25 = tpu.matmul %23, %24, %cst_19 {dimension_numbers = #tpu.dot_dimension_numbers<[1], [0], [0], [1], [0, 0, 1, 1], [], []>} : vector<16x48xf32>, vector<48x48xf32>, vector<16x48xf32> -> vector<16x48xf32>
    %c0_20 = arith.constant 0 : index
    %c0_21 = arith.constant 0 : index
    %26 = vector.load %arg8[%c0_20, %c0_21] : memref<1x48xf32, #tpu.memory_space<vmem>>, vector<1x48xf32>
    %27 = vector.broadcast %26 : vector<1x48xf32> to vector<16x48xf32>
    %28 = arith.addf %25, %27 : vector<16x48xf32>
    %cst_22 = arith.constant 0.000000e+00 : f32
    %29 = vector.broadcast %cst_22 : f32 to vector<16x48xf32>
    %30 = arith.maximumf %28, %29 : vector<16x48xf32>
    %31 = vector.shape_cast %30 : vector<16x48xf32> to vector<2x8x48xf32>
    %cst_23 = arith.constant dense<0.000000e+00> : vector<2x48xf32>
    %32 = vector.multi_reduction <add>, %31, %cst_23 [1] : vector<2x8x48xf32> to vector<2x48xf32>
    %c0_24 = arith.constant 0 : index
    %c0_25 = arith.constant 0 : index
    %33 = vector.load %arg9[%c0_24, %c0_25] : memref<16x32xf32, #tpu.memory_space<vmem>>, vector<16x32xf32>
    %cst_26 = arith.constant dense<0.000000e+00> : vector<16x32xf32>
    %34 = tpu.matmul %6, %33, %cst_26 {dimension_numbers = #tpu.dot_dimension_numbers<[1], [0], [0], [1], [0, 0, 1, 1], [], []>} : vector<16x16xf32>, vector<16x32xf32>, vector<16x32xf32> -> vector<16x32xf32>
    %c0_27 = arith.constant 0 : index
    %c0_28 = arith.constant 0 : index
    %35 = vector.load %arg10[%c0_27, %c0_28] : memref<1x32xf32, #tpu.memory_space<vmem>>, vector<1x32xf32>
    %36 = vector.broadcast %35 : vector<1x32xf32> to vector<16x32xf32>
    %37 = arith.addf %34, %36 : vector<16x32xf32>
    %cst_29 = arith.constant 0.000000e+00 : f32
    %38 = vector.broadcast %cst_29 : f32 to vector<16x32xf32>
    %39 = arith.maximumf %37, %38 : vector<16x32xf32>
    %c0_30 = arith.constant 0 : index
    %c0_31 = arith.constant 0 : index
    %40 = vector.load %arg11[%c0_30, %c0_31] : memref<32x96xf32, #tpu.memory_space<vmem>>, vector<32x96xf32>
    %cst_32 = arith.constant dense<0.000000e+00> : vector<16x96xf32>
    %41 = tpu.matmul %39, %40, %cst_32 {dimension_numbers = #tpu.dot_dimension_numbers<[1], [0], [0], [1], [0, 0, 1, 1], [], []>} : vector<16x32xf32>, vector<32x96xf32>, vector<16x96xf32> -> vector<16x96xf32>
    %c0_33 = arith.constant 0 : index
    %c0_34 = arith.constant 0 : index
    %42 = vector.load %arg12[%c0_33, %c0_34] : memref<11x96xf32, #tpu.memory_space<vmem>>, vector<11x96xf32>
    %cst_35 = arith.constant dense<0.000000e+00> : vector<16x96xf32>
    %43 = tpu.matmul %5, %42, %cst_35 {dimension_numbers = #tpu.dot_dimension_numbers<[1], [0], [0], [1], [0, 0, 1, 1], [], []>} : vector<16x11xf32>, vector<11x96xf32>, vector<16x96xf32> -> vector<16x96xf32>
    %44 = arith.addf %41, %43 : vector<16x96xf32>
    %c0_36 = arith.constant 0 : index
    %c0_37 = arith.constant 0 : index
    %45 = vector.load %arg13[%c0_36, %c0_37] : memref<48x96xf32, #tpu.memory_space<vmem>>, vector<48x96xf32>
    %cst_38 = arith.constant dense<0.000000e+00> : vector<2x96xf32>
    %46 = tpu.matmul %32, %45, %cst_38 {dimension_numbers = #tpu.dot_dimension_numbers<[1], [0], [0], [1], [0, 0, 1, 1], [], []>} : vector<2x48xf32>, vector<48x96xf32>, vector<2x96xf32> -> vector<2x96xf32>
    %47 = vector.shape_cast %46 : vector<2x96xf32> to vector<2x1x96xf32>
    %48 = vector.shape_cast %47 : vector<2x1x96xf32> to vector<2x1x96xf32>
    %49 = vector.broadcast %48 : vector<2x1x96xf32> to vector<2x8x96xf32>
    %50 = vector.shape_cast %49 : vector<2x8x96xf32> to vector<16x96xf32>
    %51 = arith.addf %44, %50 : vector<16x96xf32>
    %c0_39 = arith.constant 0 : index
    %c0_40 = arith.constant 0 : index
    %52 = vector.load %arg14[%c0_39, %c0_40] : memref<1x96xf32, #tpu.memory_space<vmem>>, vector<1x96xf32>
    %53 = vector.broadcast %52 : vector<1x96xf32> to vector<16x96xf32>
    %54 = arith.addf %51, %53 : vector<16x96xf32>
    %cst_41 = arith.constant 0.000000e+00 : f32
    %55 = vector.broadcast %cst_41 : f32 to vector<16x96xf32>
    %56 = arith.maximumf %54, %55 : vector<16x96xf32>
    %c0_42 = arith.constant 0 : index
    %c0_43 = arith.constant 0 : index
    %57 = vector.load %arg15[%c0_42, %c0_43] : memref<96x96xf32, #tpu.memory_space<vmem>>, vector<96x96xf32>
    %cst_44 = arith.constant dense<0.000000e+00> : vector<16x96xf32>
    %58 = tpu.matmul %56, %57, %cst_44 {dimension_numbers = #tpu.dot_dimension_numbers<[1], [0], [0], [1], [0, 0, 1, 1], [], []>} : vector<16x96xf32>, vector<96x96xf32>, vector<16x96xf32> -> vector<16x96xf32>
    %c0_45 = arith.constant 0 : index
    %c0_46 = arith.constant 0 : index
    %59 = vector.load %arg16[%c0_45, %c0_46] : memref<1x96xf32, #tpu.memory_space<vmem>>, vector<1x96xf32>
    %60 = vector.broadcast %59 : vector<1x96xf32> to vector<16x96xf32>
    %61 = arith.addf %58, %60 : vector<16x96xf32>
    %cst_47 = arith.constant 0.000000e+00 : f32
    %62 = vector.broadcast %cst_47 : f32 to vector<16x96xf32>
    %63 = arith.maximumf %61, %62 : vector<16x96xf32>
    %64 = vector.shape_cast %63 : vector<16x96xf32> to vector<2x8x96xf32>
    %cst_48 = arith.constant dense<0.000000e+00> : vector<2x96xf32>
    %65 = vector.multi_reduction <add>, %64, %cst_48 [1] : vector<2x8x96xf32> to vector<2x96xf32>
    %c0_49 = arith.constant 0 : index
    %c0_50 = arith.constant 0 : index
    %66 = vector.load %arg17[%c0_49, %c0_50] : memref<16x32xf32, #tpu.memory_space<vmem>>, vector<16x32xf32>
    %cst_51 = arith.constant dense<0.000000e+00> : vector<16x32xf32>
    %67 = tpu.matmul %6, %66, %cst_51 {dimension_numbers = #tpu.dot_dimension_numbers<[1], [0], [0], [1], [0, 0, 1, 1], [], []>} : vector<16x16xf32>, vector<16x32xf32>, vector<16x32xf32> -> vector<16x32xf32>
    %c0_52 = arith.constant 0 : index
    %c0_53 = arith.constant 0 : index
    %68 = vector.load %arg18[%c0_52, %c0_53] : memref<1x32xf32, #tpu.memory_space<vmem>>, vector<1x32xf32>
    %69 = vector.broadcast %68 : vector<1x32xf32> to vector<16x32xf32>
    %70 = arith.addf %67, %69 : vector<16x32xf32>
    %cst_54 = arith.constant 0.000000e+00 : f32
    %71 = vector.broadcast %cst_54 : f32 to vector<16x32xf32>
    %72 = arith.maximumf %70, %71 : vector<16x32xf32>
    %c0_55 = arith.constant 0 : index
    %c0_56 = arith.constant 0 : index
    %73 = vector.load %arg19[%c0_55, %c0_56] : memref<32x144xf32, #tpu.memory_space<vmem>>, vector<32x144xf32>
    %cst_57 = arith.constant dense<0.000000e+00> : vector<16x144xf32>
    %74 = tpu.matmul %72, %73, %cst_57 {dimension_numbers = #tpu.dot_dimension_numbers<[1], [0], [0], [1], [0, 0, 1, 1], [], []>} : vector<16x32xf32>, vector<32x144xf32>, vector<16x144xf32> -> vector<16x144xf32>
    %c0_58 = arith.constant 0 : index
    %c0_59 = arith.constant 0 : index
    %75 = vector.load %arg20[%c0_58, %c0_59] : memref<11x144xf32, #tpu.memory_space<vmem>>, vector<11x144xf32>
    %cst_60 = arith.constant dense<0.000000e+00> : vector<16x144xf32>
    %76 = tpu.matmul %5, %75, %cst_60 {dimension_numbers = #tpu.dot_dimension_numbers<[1], [0], [0], [1], [0, 0, 1, 1], [], []>} : vector<16x11xf32>, vector<11x144xf32>, vector<16x144xf32> -> vector<16x144xf32>
    %77 = arith.addf %74, %76 : vector<16x144xf32>
    %c0_61 = arith.constant 0 : index
    %c0_62 = arith.constant 0 : index
    %78 = vector.load %arg21[%c0_61, %c0_62] : memref<96x144xf32, #tpu.memory_space<vmem>>, vector<96x144xf32>
    %cst_63 = arith.constant dense<0.000000e+00> : vector<2x144xf32>
    %79 = tpu.matmul %65, %78, %cst_63 {dimension_numbers = #tpu.dot_dimension_numbers<[1], [0], [0], [1], [0, 0, 1, 1], [], []>} : vector<2x96xf32>, vector<96x144xf32>, vector<2x144xf32> -> vector<2x144xf32>
    %80 = vector.shape_cast %79 : vector<2x144xf32> to vector<2x1x144xf32>
    %81 = vector.shape_cast %80 : vector<2x1x144xf32> to vector<2x1x144xf32>
    %82 = vector.broadcast %81 : vector<2x1x144xf32> to vector<2x8x144xf32>
    %83 = vector.shape_cast %82 : vector<2x8x144xf32> to vector<16x144xf32>
    %84 = arith.addf %77, %83 : vector<16x144xf32>
    %c0_64 = arith.constant 0 : index
    %c0_65 = arith.constant 0 : index
    %85 = vector.load %arg22[%c0_64, %c0_65] : memref<1x144xf32, #tpu.memory_space<vmem>>, vector<1x144xf32>
    %86 = vector.broadcast %85 : vector<1x144xf32> to vector<16x144xf32>
    %87 = arith.addf %84, %86 : vector<16x144xf32>
    %cst_66 = arith.constant 0.000000e+00 : f32
    %88 = vector.broadcast %cst_66 : f32 to vector<16x144xf32>
    %89 = arith.maximumf %87, %88 : vector<16x144xf32>
    %c0_67 = arith.constant 0 : index
    %c0_68 = arith.constant 0 : index
    %90 = vector.load %arg23[%c0_67, %c0_68] : memref<144x144xf32, #tpu.memory_space<vmem>>, vector<144x144xf32>
    %cst_69 = arith.constant dense<0.000000e+00> : vector<16x144xf32>
    %91 = tpu.matmul %89, %90, %cst_69 {dimension_numbers = #tpu.dot_dimension_numbers<[1], [0], [0], [1], [0, 0, 1, 1], [], []>} : vector<16x144xf32>, vector<144x144xf32>, vector<16x144xf32> -> vector<16x144xf32>
    %c0_70 = arith.constant 0 : index
    %c0_71 = arith.constant 0 : index
    %92 = vector.load %arg24[%c0_70, %c0_71] : memref<1x144xf32, #tpu.memory_space<vmem>>, vector<1x144xf32>
    %93 = vector.broadcast %92 : vector<1x144xf32> to vector<16x144xf32>
    %94 = arith.addf %91, %93 : vector<16x144xf32>
    %cst_72 = arith.constant 0.000000e+00 : f32
    %95 = vector.broadcast %cst_72 : f32 to vector<16x144xf32>
    %96 = arith.maximumf %94, %95 : vector<16x144xf32>
    %97 = vector.shape_cast %96 : vector<16x144xf32> to vector<2x8x144xf32>
    %cst_73 = arith.constant dense<0.000000e+00> : vector<2x144xf32>
    %98 = vector.multi_reduction <add>, %97, %cst_73 [1] : vector<2x8x144xf32> to vector<2x144xf32>
    %c0_74 = arith.constant 0 : index
    %c0_75 = arith.constant 0 : index
    %99 = vector.load %arg25[%c0_74, %c0_75] : memref<2x144xf32, #tpu.memory_space<vmem>>, vector<2x144xf32>
    tpu.vector_store %arg25[%c0_74, %c0_75], %98 {strides = array<i32>} : memref<2x144xf32, #tpu.memory_space<vmem>>, vector<2x144xf32>,
    return
  }
}

</mosaic_0001>

<bundles_post_ra>
// kernel: tpu_custom_call.1
= control target key start
LH: loop header
LB: loop body
LE: loop exit
PB: predicated region body
PF: predicated region fallthrough
CT: control target
= control target key end

     0   :  { %s3348_s0 = inlined_call_operand.hbm [shape: f32[16,16], index: 0, kind: input, shape index: {}]   ;;  %s3349_s1 = inlined_call_operand.vmem [shape: s32[16,1], index: 1, kind: input, shape index: {}]   ;;  %s3350_s2 = inlined_call_operand.hbm [shape: f32[16,32], index: 2, kind: input, shape index: {}]   ;;  %s3351_s3 = inlined_call_operand.vmem [shape: f32[1,32], index: 3, kind: input, shape index: {}]   ;;  %s3352_s4 = inlined_call_operand.hbm [shape: f32[32,48], index: 4, kind: input, shape index: {}]   ;;  %s3353_s5 = inlined_call_operand.hbm [shape: f32[11,48], index: 5, kind: input, shape index: {}]   ;;  %s3354_s6 = inlined_call_operand.vmem [shape: f32[1,48], index: 6, kind: input, shape index: {}]   ;;  %s3355_s7 = inlined_call_operand.vmem [shape: f32[48,48], index: 7, kind: input, shape index: {}]   ;;  %s3356_s8 = inlined_call_operand.vmem [shape: f32[1,48], index: 8, kind: input, shape index: {}]   ;;  %s3357_s9 = inlined_call_operand.hbm [shape: f32[16,32], index: 9, kind: input, shape index: {}]   ;;  %s3358_s10 = inlined_call_operand.vmem [shape: f32[1,32], index: 10, kind: input, shape index: {}]   ;;  %s3359_s11 = inlined_call_operand.hbm [shape: f32[32,96], index: 11, kind: input, shape index: {}]   ;;  %s3360_s12 = inlined_call_operand.hbm [shape: f32[11,96], index: 12, kind: input, shape index: {}]   ;;  %s3361_s13 = inlined_call_operand.hbm [shape: f32[48,96], index: 13, kind: input, shape index: {}]   ;;  %s3362_s14 = inlined_call_operand.hbm [shape: f32[1,96], index: 14, kind: input, shape index: {}]   ;;  %s3363_s15 = inlined_call_operand.vmem [shape: f32[96,96], index: 15, kind: input, shape index: {}]   ;;  %s3364_s16 = inlined_call_operand.hbm [shape: f32[1,96], index: 16, kind: input, shape index: {}]   ;;  %s3365_s17 = inlined_call_operand.hbm [shape: f32[16,32], index: 17, kind: input, shape index: {}]   ;;  %s3366_s18 = inlined_call_operand.hbm [shape: f32[1,32], index: 18, kind: input, shape index: {}]   ;;  %s3367_s19 = inlined_call_operand.hbm [shape: f32[32,144], index: 19, kind: input, shape index: {}]   ;;  %s3368_s20 = inlined_call_operand.hbm [shape: f32[11,144], index: 20, kind: input, shape index: {}]   ;;  %s3369_s21 = inlined_call_operand.vmem [shape: f32[96,144], index: 21, kind: input, shape index: {}]   ;;  %s3370_s22 = inlined_call_operand.vmem [shape: f32[1,144], index: 22, kind: input, shape index: {}]   ;;  %s3371_s23 = inlined_call_operand.vmem [shape: f32[144,144], index: 23, kind: input, shape index: {}]   ;;  %s3372_s24 = inlined_call_operand.vmem [shape: f32[1,144], index: 24, kind: input, shape index: {}]   ;;  %s3373_s25 = inlined_call_operand.hbm [shape: f32[2,144], index: 25, kind: output, shape index: {}]  }
   0x1   :  { %3382 = sst [smem:[#allocation35_spill]] %s3348_s0 }
   0x2   :  { %3383 = sst [smem:[#allocation36_spill]] %s3349_s1 }
   0x3   :  { %3384 = sst [smem:[#allocation37_spill]] %s3350_s2 }
   0x4   :  { %3385 = sst [smem:[#allocation38_spill]] %s3351_s3 }
   0x5   :  { %3386 = sst [smem:[#allocation39_spill]] %s3352_s4 }
   0x6   :  { %3387 = sst [smem:[#allocation40_spill]] %s3353_s5 }
   0x7   :  { %3388 = sst [smem:[#allocation41_spill]] %s3354_s6 }
   0x8   :  { %3389 = sst [smem:[#allocation42_spill]] %s3355_s7 }
   0x9   :  { %3390 = sst [smem:[#allocation43_spill]] %s3356_s8 }
   0xa   :  { %3391 = sst [smem:[#allocation44_spill]] %s3357_s9 }
   0xb   :  { %3392 = sst [smem:[#allocation45_spill]] %s3372_s24 }
   0xc   :  { %3393 = sst [smem:[#allocation46_spill]] %s3373_s25 }
   0xd   :  { %30 = vsyncpa [#allocation3], 0 }
   0xe   :  { %31 = vsyncpa [#allocation6], 0 }
   0xf   :  { %32 = vsyncpa [#allocation9], 0 }
  0x10   :  { %33 = vsyncpa [#allocation12], 0 }
  0x11   :  { %34 = vsyncpa [#allocation15], 0 }
  0x12   :  { %35 = vsyncpa [#allocation18], 0 }
  0x13   :  { %36 = vsyncpa [#allocation21], 0 }
  0x14   :  { %37 = vsyncpa [#allocation24], 0 }
  0x15   :  { %38 = vsyncpa [#allocation4], 0  ;;  %s2577_s29 = smov [#allocation5]   ;;  %s2578_s6 = smov [#allocation8]  }
  0x16   :  { %s58_s2 = sshll.u32 %s2577_s29, 4  ;;  %s84_s30 = sshll.u32 %s2578_s6, 4  ;;  %s59_s2 = int_to_ptr.vmem [resolvable:$true] %s58_s2  ;;  %s2733_s30 = int_to_ptr.vmem [resolvable:$true] %s84_s30 }
  0x17   :  { %s3394_s26 = sld [smem:[#allocation37_spill]] }
  0x1d   :  { %s2229_s1 = scalar_lea.hbm %s3394_s26, 256 }
  0x1e   :  { %p2230_p0 = scmp.ne.s32.totalorder %s3394_s26, %s2229_s1  ;;  %p2233_p1 = scmp.lt.u32.totalorder %s2229_s1, %s3394_s26 }
  0x20   :  { %p2235_p2 = pnand %p2233_p1, %p2230_p0 }
  0x22   :  { %2238 = shalt.err (!%p2235_p2)
}
  0x23   :  { %s2239_s9 = scalar_lea.vmem %s59_s2, 256  ;;  %p2244_p4 = scmp.lt.s32.totalorder %s59_s2, %s59_s2 }
  0x24   :  { %p2240_p3 = scmp.ne.s32.totalorder %s59_s2, %s2239_s9  ;;  %p2245_p5 = scmp.lt.s32.totalorder %s2239_s9, %s2239_s9 }
  0x26   :  { %p2246_p6 = por %p2245_p5, %p2244_p4 }
  0x28   :  { %p2247_p7 = pnand %p2246_p6, %p2240_p3 }
  0x2a   :  { %2250 = shalt.err (!%p2247_p7)
}
  0x2b   :  { %s2579_s5 = smov 128   ;;  %s2580_s0 = smov 8  }
  0x2c   :  { %64 = dma.hbm_to_vmem [thread:$0]  %s3394_s26, 256, %s59_s2, [#allocation6], %s2579_s5, %s2579_s5, %s2580_s0  }
  0x2d   :  { %s3395_s1 = sld [smem:[#allocation40_spill]] }
  0x33   :  { %s2251_s8 = scalar_lea.hbm %s3395_s1, 256 }
  0x34   :  { %p2252_p8 = scmp.ne.s32.totalorder %s3395_s1, %s2251_s8  ;;  %p2255_p9 = scmp.lt.u32.totalorder %s2251_s8, %s3395_s1 }
  0x36   :  { %p2257_p10 = pnand %p2255_p9, %p2252_p8 }
  0x38   :  { %2260 = shalt.err (!%p2257_p10)
}
  0x39   :  { %s2261_s25 = scalar_lea.vmem %s2733_s30, 256  ;;  %p2266_p12 = scmp.lt.s32.totalorder %s2733_s30, %s2733_s30 }
  0x3a   :  { %p2262_p11 = scmp.ne.s32.totalorder %s2733_s30, %s2261_s25  ;;  %p2267_p13 = scmp.lt.s32.totalorder %s2261_s25, %s2261_s25 }
  0x3c   :  { %p2268_p0 = por %p2267_p13, %p2266_p12 }
  0x3e   :  { %p2269_p1 = pnand %p2268_p0, %p2262_p11 }
  0x40   :  { %2272 = shalt.err (!%p2269_p1)
}
  0x41   :  { %90 = dma.hbm_to_vmem [thread:$0]  %s3395_s1, 256, %s2733_s30, [#allocation9], %s2579_s5, %s2579_s5, %s2580_s0  }
  0x42   :  { %s2581_s29 = smov [#allocation11]   ;;  %s2582_s7 = smov [#allocation14]  }
  0x43   :  { %s116_s6 = sshll.u32 %s2581_s29, 4  ;;  %s140_s3 = sshll.u32 %s2582_s7, 4  ;;  %s117_s6 = int_to_ptr.vmem [resolvable:$true] %s116_s6  ;;  %s2770_s3 = int_to_ptr.vmem [resolvable:$true] %s140_s3 }
  0x44   :  { %s2273_s27 = scalar_lea.hbm %s3359_s11, 512 }
  0x45   :  { %p2274_p2 = scmp.ne.s32.totalorder %s3359_s11, %s2273_s27  ;;  %p2277_p3 = scmp.lt.u32.totalorder %s2273_s27, %s3359_s11 }
  0x47   :  { %p2279_p4 = pnand %p2277_p3, %p2274_p2 }
  0x49   :  { %2282 = shalt.err (!%p2279_p4)
}
  0x4a   :  { %s2283_s30 = scalar_lea.vmem %s117_s6, 512  ;;  %p2288_p6 = scmp.lt.s32.totalorder %s117_s6, %s117_s6 }
  0x4b   :  { %p2284_p5 = scmp.ne.s32.totalorder %s117_s6, %s2283_s30  ;;  %p2289_p7 = scmp.lt.s32.totalorder %s2283_s30, %s2283_s30 }
  0x4d   :  { %p2290_p8 = por %p2289_p7, %p2288_p6 }
  0x4f   :  { %p2291_p9 = pnand %p2290_p8, %p2284_p5 }
  0x51   :  { %2294 = shalt.err (!%p2291_p9)
}
  0x52   :  { %122 = dma.hbm_to_vmem [thread:$0]  %s3359_s11, 512, %s117_s6, [#allocation12], %s2579_s5, %s2579_s5, %s2580_s0  }
  0x53   :  { %s2295_s24 = scalar_lea.hbm %s3361_s13, 768 }
  0x54   :  { %p2296_p10 = scmp.ne.s32.totalorder %s3361_s13, %s2295_s24  ;;  %p2299_p11 = scmp.lt.u32.totalorder %s2295_s24, %s3361_s13 }
  0x56   :  { %p2301_p12 = pnand %p2299_p11, %p2296_p10 }
  0x58   :  { %2304 = shalt.err (!%p2301_p12)
}
  0x59   :  { %s2305_s4 = scalar_lea.vmem %s2770_s3, 768  ;;  %p2310_p0 = scmp.lt.s32.totalorder %s2770_s3, %s2770_s3 }
  0x5a   :  { %p2306_p13 = scmp.ne.s32.totalorder %s2770_s3, %s2305_s4  ;;  %p2311_p1 = scmp.lt.s32.totalorder %s2305_s4, %s2305_s4 }
  0x5c   :  { %p2312_p2 = por %p2311_p1, %p2310_p0 }
  0x5e   :  { %p2313_p3 = pnand %p2312_p2, %p2306_p13 }
  0x60   :  { %2316 = shalt.err (!%p2313_p3)
}
  0x61   :  { %146 = dma.hbm_to_vmem [thread:$0]  %s3361_s13, 768, %s2770_s3, [#allocation15], %s2579_s5, %s2579_s5, %s2580_s0  }
  0x62   :  { %s2583_s28 = smov [#allocation17]   ;;  %s2584_s30 = smov [#allocation20]  }
  0x63   :  { %s165_s9 = sshll.u32 %s2583_s28, 4  ;;  %s187_s1 = sshll.u32 %s2584_s30, 4  ;;  %s166_s9 = int_to_ptr.vmem [resolvable:$true] %s165_s9  ;;  %s188_s1 = int_to_ptr.vmem [resolvable:$true] %s187_s1 }
  0x64   :  { %s2317_s29 = scalar_lea.hbm %s3364_s16, 16 }
  0x65   :  { %p2318_p4 = scmp.ne.s32.totalorder %s3364_s16, %s2317_s29  ;;  %p2321_p5 = scmp.lt.u32.totalorder %s2317_s29, %s3364_s16 }
  0x67   :  { %p2323_p6 = pnand %p2321_p5, %p2318_p4 }
  0x69   :  { %2326 = shalt.err (!%p2323_p6)
}
  0x6a   :  { %s2327_s13 = scalar_lea.vmem %s166_s9, 16  ;;  %s2331_s3 = scalar_lea.vmem %s166_s9, 32 }
  0x6b   :  { %p2328_p7 = scmp.ne.s32.totalorder %s166_s9, %s2327_s13  ;;  %p2332_p8 = scmp.lt.s32.totalorder %s166_s9, %s166_s9 }
  0x6c   :  { %p2333_p9 = scmp.lt.s32.totalorder %s2331_s3, %s2327_s13 }
  0x6e   :  { %p2334_p10 = por %p2333_p9, %p2332_p8 }
  0x70   :  { %p2335_p11 = pnand %p2334_p10, %p2328_p7 }
  0x72   :  { %2338 = shalt.err (!%p2335_p11)
}
  0x73   :  { %168 = dma.hbm_to_vmem [thread:$0]  %s3364_s16, 16, %s166_s9, [#allocation18]  }
  0x74   :  { %s2339_s28 = scalar_lea.hbm %s3366_s18, 16 }
  0x75   :  { %p2340_p12 = scmp.ne.s32.totalorder %s3366_s18, %s2339_s28  ;;  %p2343_p13 = scmp.lt.u32.totalorder %s2339_s28, %s3366_s18 }
  0x77   :  { %p2345_p0 = pnand %p2343_p13, %p2340_p12 }
  0x79   :  { %2348 = shalt.err (!%p2345_p0)
}
  0x7a   :  { %s2349_s24 = scalar_lea.vmem %s188_s1, 16  ;;  %s2353_s7 = scalar_lea.vmem %s188_s1, 32 }
  0x7b   :  { %p2350_p1 = scmp.ne.s32.totalorder %s188_s1, %s2349_s24  ;;  %p2354_p2 = scmp.lt.s32.totalorder %s188_s1, %s188_s1 }
  0x7c   :  { %p2355_p3 = scmp.lt.s32.totalorder %s2353_s7, %s2349_s24 }
  0x7e   :  { %p2356_p4 = por %p2355_p3, %p2354_p2 }
  0x80   :  { %p2357_p5 = pnand %p2356_p4, %p2350_p1 }
  0x82   :  { %2360 = shalt.err (!%p2357_p5)
}
  0x83   :  { %190 = dma.hbm_to_vmem [thread:$0]  %s3366_s18, 16, %s188_s1, [#allocation21]  }
  0x84   :  { %s2585_s8 = smov [#allocation2]   ;;  %s2586_s13 = smov [#allocation7]  }
  0x85   :  { %s44_s25 = sshll.u32 %s2585_s8, 4  ;;  %s72_s3 = sshll.u32 %s2586_s13, 4  ;;  %s45_s25 = int_to_ptr.vmem [resolvable:$true] %s44_s25  ;;  %s2831_s3 = int_to_ptr.vmem [resolvable:$true] %s72_s3 }
  0x86   :  { %s3396_s11 = sld [smem:[#allocation35_spill]] }
  0x8c   :  { %s2361_s6 = scalar_lea.hbm %s3396_s11, 256 }
  0x8d   :  { %p2362_p6 = scmp.ne.s32.totalorder %s3396_s11, %s2361_s6  ;;  %p2365_p7 = scmp.lt.u32.totalorder %s2361_s6, %s3396_s11 }
  0x8f   :  { %p2367_p8 = pnand %p2365_p7, %p2362_p6 }
  0x91   :  { %2370 = shalt.err (!%p2367_p8)
}
  0x92   :  { %s2371_s18 = scalar_lea.vmem %s45_s25, 256  ;;  %p2376_p10 = scmp.lt.s32.totalorder %s45_s25, %s45_s25 }
  0x93   :  { %p2372_p9 = scmp.ne.s32.totalorder %s45_s25, %s2371_s18  ;;  %p2377_p11 = scmp.lt.s32.totalorder %s2371_s18, %s2371_s18 }
  0x95   :  { %p2378_p12 = por %p2377_p11, %p2376_p10 }
  0x97   :  { %p2379_p13 = pnand %p2378_p12, %p2372_p9 }
  0x99   :  { %2382 = shalt.err (!%p2379_p13)
}
  0x9a   :  { %50 = dma.hbm_to_vmem [thread:$0]  %s3396_s11, 256, %s45_s25, [#allocation3], %s2579_s5, %s2579_s5, %s2580_s0  }
  0x9b   :  { %s3397_s16 = sld [smem:[#allocation39_spill]] }
  0xa1   :  { %s2383_s9 = scalar_lea.hbm %s3397_s16, 512 }
  0xa2   :  { %p2384_p0 = scmp.ne.s32.totalorder %s3397_s16, %s2383_s9  ;;  %p2387_p1 = scmp.lt.u32.totalorder %s2383_s9, %s3397_s16 }
  0xa4   :  { %p2389_p2 = pnand %p2387_p1, %p2384_p0 }
  0xa6   :  { %2392 = shalt.err (!%p2389_p2)
}
  0xa7   :  { %s2393_s6 = scalar_lea.vmem %s2831_s3, 512  ;;  %p2398_p4 = scmp.lt.s32.totalorder %s2831_s3, %s2831_s3 }
  0xa8   :  { %p2394_p3 = scmp.ne.s32.totalorder %s2831_s3, %s2393_s6  ;;  %p2399_p5 = scmp.lt.s32.totalorder %s2393_s6, %s2393_s6 }
  0xaa   :  { %p2400_p6 = por %p2399_p5, %p2398_p4 }
  0xac   :  { %p2401_p7 = pnand %p2400_p6, %p2394_p3 }
  0xae   :  { %2404 = shalt.err (!%p2401_p7)
}
  0xaf   :  { %78 = dma.hbm_to_vmem [thread:$0]  %s3397_s16, 512, %s2831_s3, [#allocation6], %s2579_s5, %s2579_s5, %s2580_s0  }
  0xb0   :  { %s2587_s28 = smov [#allocation10]   ;;  %s2588_s2 = smov [#allocation13]  }
  0xb1   :  { %s102_s30 = sshll.u32 %s2587_s28, 4  ;;  %s128_s26 = sshll.u32 %s2588_s2, 4  ;;  %s103_s30 = int_to_ptr.vmem [resolvable:$true] %s102_s30  ;;  %s2868_s26 = int_to_ptr.vmem [resolvable:$true] %s128_s26 }
  0xb2   :  { %s3398_s29 = sld [smem:[#allocation44_spill]] }
  0xb8   :  { %s2405_s24 = scalar_lea.hbm %s3398_s29, 256 }
  0xb9   :  { %p2406_p8 = scmp.ne.s32.totalorder %s3398_s29, %s2405_s24  ;;  %p2409_p9 = scmp.lt.u32.totalorder %s2405_s24, %s3398_s29 }
  0xbb   :  { %p2411_p10 = pnand %p2409_p9, %p2406_p8 }
  0xbd   :  { %2414 = shalt.err (!%p2411_p10)
}
  0xbe   :  { %s2415_s3 = scalar_lea.vmem %s103_s30, 256  ;;  %p2420_p12 = scmp.lt.s32.totalorder %s103_s30, %s103_s30 }
  0xbf   :  { %p2416_p11 = scmp.ne.s32.totalorder %s103_s30, %s2415_s3  ;;  %p2421_p13 = scmp.lt.s32.totalorder %s2415_s3, %s2415_s3 }
  0xc1   :  { %p2422_p0 = por %p2421_p13, %p2420_p12 }
  0xc3   :  { %p2423_p1 = pnand %p2422_p0, %p2416_p11 }
  0xc5   :  { %2426 = shalt.err (!%p2423_p1)
}
  0xc6   :  { %108 = dma.hbm_to_vmem [thread:$0]  %s3398_s29, 256, %s103_s30, [#allocation9], %s2579_s5, %s2579_s5, %s2580_s0  }
  0xc7   :  { %s2427_s25 = scalar_lea.hbm %s3360_s12, 256 }
  0xc8   :  { %p2428_p2 = scmp.ne.s32.totalorder %s3360_s12, %s2427_s25  ;;  %p2431_p3 = scmp.lt.u32.totalorder %s2427_s25, %s3360_s12 }
  0xca   :  { %p2433_p4 = pnand %p2431_p3, %p2428_p2 }
  0xcc   :  { %2436 = shalt.err (!%p2433_p4)
}
  0xcd   :  { %s2437_s1 = scalar_lea.vmem %s2868_s26, 256  ;;  %p2442_p6 = scmp.lt.s32.totalorder %s2868_s26, %s2868_s26 }
  0xce   :  { %p2438_p5 = scmp.ne.s32.totalorder %s2868_s26, %s2437_s1  ;;  %p2443_p7 = scmp.lt.s32.totalorder %s2437_s1, %s2437_s1 }
  0xd0   :  { %p2444_p8 = por %p2443_p7, %p2442_p6 }
  0xd2   :  { %p2445_p9 = pnand %p2444_p8, %p2438_p5 }
  0xd4   :  { %2448 = shalt.err (!%p2445_p9)
}
  0xd5   :  { %134 = dma.hbm_to_vmem [thread:$0]  %s3360_s12, 256, %s2868_s26, [#allocation12], %s2579_s5, %s2579_s5, %s2580_s0  }
  0xd6   :  { %s2589_s24 = smov [#allocation16]   ;;  %s2590_s9 = smov [#allocation19]  }
  0xd7   :  { %s153_s7 = sshll.u32 %s2589_s24, 4  ;;  %s174_s8 = sshll.u32 %s2590_s9, 4  ;;  %s154_s7 = int_to_ptr.vmem [resolvable:$true] %s153_s7  ;;  %s2905_s8 = int_to_ptr.vmem [resolvable:$true] %s174_s8 }
  0xd8   :  { %s2449_s16 = scalar_lea.hbm %s3362_s14, 16 }
  0xd9   :  { %p2450_p10 = scmp.ne.s32.totalorder %s3362_s14, %s2449_s16  ;;  %p2453_p11 = scmp.lt.u32.totalorder %s2449_s16, %s3362_s14 }
  0xdb   :  { %p2455_p12 = pnand %p2453_p11, %p2450_p10 }
  0xdd   :  { %2458 = shalt.err (!%p2455_p12)
}
  0xde   :  { %s2459_s12 = scalar_lea.vmem %s154_s7, 16  ;;  %s2463_s26 = scalar_lea.vmem %s154_s7, 32 }
  0xdf   :  { %p2460_p13 = scmp.ne.s32.totalorder %s154_s7, %s2459_s12  ;;  %p2464_p0 = scmp.lt.s32.totalorder %s154_s7, %s154_s7 }
  0xe0   :  { %p2465_p1 = scmp.lt.s32.totalorder %s2463_s26, %s2459_s12 }
  0xe2   :  { %p2466_p2 = por %p2465_p1, %p2464_p0 }
  0xe4   :  { %p2467_p3 = pnand %p2466_p2, %p2460_p13 }
  0xe6   :  { %2470 = shalt.err (!%p2467_p3)
}
  0xe7   :  { %156 = dma.hbm_to_vmem [thread:$0]  %s3362_s14, 16, %s154_s7, [#allocation15]  }
  0xe8   :  { %s2471_s1 = scalar_lea.hbm %s3365_s17, 256 }
  0xe9   :  { %p2472_p4 = scmp.ne.s32.totalorder %s3365_s17, %s2471_s1  ;;  %p2475_p5 = scmp.lt.u32.totalorder %s2471_s1, %s3365_s17 }
  0xeb   :  { %p2477_p6 = pnand %p2475_p5, %p2472_p4 }
  0xed   :  { %2480 = shalt.err (!%p2477_p6)
}
  0xee   :  { %s2481_s13 = scalar_lea.vmem %s2905_s8, 256  ;;  %p2486_p8 = scmp.lt.s32.totalorder %s2905_s8, %s2905_s8 }
  0xef   :  { %p2482_p7 = scmp.ne.s32.totalorder %s2905_s8, %s2481_s13  ;;  %p2487_p9 = scmp.lt.s32.totalorder %s2481_s13, %s2481_s13 }
  0xf1   :  { %p2488_p10 = por %p2487_p9, %p2486_p8 }
  0xf3   :  { %p2489_p11 = pnand %p2488_p10, %p2482_p7 }
  0xf5   :  { %2492 = shalt.err (!%p2489_p11)
}
  0xf6   :  { %180 = dma.hbm_to_vmem [thread:$0]  %s3365_s17, 256, %s2905_s8, [#allocation18], %s2579_s5, %s2579_s5, %s2580_s0  }
  0xf7   :  { %s2591_s3 = smov [#allocation22]   ;;  %s2493_s6 = scalar_lea.hbm %s3367_s19, 1024 }
  0xf8   :  { %s196_s16 = sshll.u32 %s2591_s3, 4  ;;  %p2494_p12 = scmp.ne.s32.totalorder %s3367_s19, %s2493_s6  ;;  %s197_s16 = int_to_ptr.vmem [resolvable:$true] %s196_s16 }
  0xf9   :  { %p2497_p13 = scmp.lt.u32.totalorder %s2493_s6, %s3367_s19 }
  0xfb   :  { %p2499_p0 = pnand %p2497_p13, %p2494_p12 }
  0xfd   :  { %2502 = shalt.err (!%p2499_p0)
}
  0xfe   :  { %s2503_s28 = scalar_lea.vmem %s197_s16, 1024  ;;  %p2508_p2 = scmp.lt.s32.totalorder %s197_s16, %s197_s16 }
  0xff   :  { %p2504_p1 = scmp.ne.s32.totalorder %s197_s16, %s2503_s28  ;;  %p2509_p3 = scmp.lt.s32.totalorder %s2503_s28, %s2503_s28 }
 0x101   :  { %p2510_p4 = por %p2509_p3, %p2508_p2 }
 0x103   :  { %p2511_p5 = pnand %p2510_p4, %p2504_p1 }
 0x105   :  { %2514 = shalt.err (!%p2511_p5)
}
 0x106   :  { %s2592_s17 = smov 256   ;;  %s2593_s5 = smov 16  }
 0x107   :  { %202 = dma.hbm_to_vmem [thread:$0]  %s3367_s19, 1024, %s197_s16, [#allocation21], %s2592_s17, %s2592_s17, %s2593_s5  }
 0x108   :  { %s2594_s2 = smov [#allocation23]   ;;  %s2515_s29 = scalar_lea.hbm %s3368_s20, 512 }
 0x109   :  { %s208_s18 = sshll.u32 %s2594_s2, 4  ;;  %p2516_p6 = scmp.ne.s32.totalorder %s3368_s20, %s2515_s29  ;;  %s209_s18 = int_to_ptr.vmem [resolvable:$true] %s208_s18 }
 0x10a   :  { %p2519_p7 = scmp.lt.u32.totalorder %s2515_s29, %s3368_s20 }
 0x10c   :  { %p2521_p8 = pnand %p2519_p7, %p2516_p6 }
 0x10e   :  { %2524 = shalt.err (!%p2521_p8)
}
 0x10f   :  { %s2525_s7 = scalar_lea.vmem %s209_s18, 512  ;;  %p2530_p10 = scmp.lt.s32.totalorder %s209_s18, %s209_s18 }
 0x110   :  { %p2526_p9 = scmp.ne.s32.totalorder %s209_s18, %s2525_s7  ;;  %p2531_p11 = scmp.lt.s32.totalorder %s2525_s7, %s2525_s7 }
 0x112   :  { %p2532_p12 = por %p2531_p11, %p2530_p10 }
 0x114   :  { %p2533_p13 = pnand %p2532_p12, %p2526_p9 }
 0x116   :  { %2536 = shalt.err (!%p2533_p13)
}
 0x117   :  { %214 = dma.hbm_to_vmem [thread:$0]  %s3368_s20, 512, %s209_s18, [#allocation24], %s2592_s17, %s2592_s17, %s2593_s5  }
 0x118   :  { %2559 = dma.done.wait [#allocation3], 256  }
 0x119   :  { %2560 = vsyncadd [#allocation3], 4294967040 }
 0x11a   :  { %2561 = dma.done.wait [#allocation6], 768  }
 0x11b   :  { %2562 = vsyncadd [#allocation6], 4294966528 }
 0x11c   :  { %2563 = dma.done.wait [#allocation9], 512  }
 0x11d   :  { %2564 = vsyncadd [#allocation9], 4294966784 }
 0x11e   :  { %2565 = dma.done.wait [#allocation12], 768  }
 0x11f   :  { %2566 = vsyncadd [#allocation12], 4294966528 }
 0x120   :  { %2567 = dma.done.wait [#allocation15], 784  }
 0x121   :  { %2568 = vsyncadd [#allocation15], 4294966512 }
 0x122   :  { %2569 = dma.done.wait [#allocation18], 272  }
 0x123   :  { %2570 = vsyncadd [#allocation18], 4294967024 }
 0x124   :  { %2571 = dma.done.wait [#allocation21], 1040  }
 0x125   :  { %2572 = vsyncadd [#allocation21], 4294966256 }
 0x126   :  { %2573 = dma.done.wait [#allocation24], 512  }
 0x127   :  { %2574 = vsyncadd [#allocation24], 4294966784  ;;  %v2595_v0 = vmov 0   ;;  %vm292_vm0 = vcmask 130048   ;;  %v283_v1 = vld [vmem:[#allocation5] sm:$0xff]  ;;  %v284_v2 = vld [vmem:[#allocation5 + $0x8] sm:$0xff]  ;;  %v267_v18 = vlaneseq }
 0x128   :  { %2228 = vset.pattern.permute.xlu0 %v2595_v0  ;;  %v2963_v3 = vld [vmem:[#allocation2] sm:$0xff]  ;;  %v2035_v4 = vpack.c.bf16 %v284_v2, %v283_v1  ;;  %s3399_s27 = sld [smem:[#allocation36_spill]]  ;;  %v381_v8 = vld [vmem:[#allocation8 + $0x8] sm:$0x7]  ;;  %vm389_vm1 = vcmask 1042432   ;;  %vm2596_vm2 = vmmov 1  }
 0x129   :  { %1925 = vmatprep.mubr.msk.f32.mxu0 %vm292_vm0, %v2963_v3  ;;  %v380_v7 = vld [vmem:[#allocation8] sm:$0xff]  ;;  %v2973_v10 = vld [vmem:[#allocation2 + $0x8] sm:$0xff]  ;;  %vm2975_vm3 = vmpackc.low %vm389_vm1, %vm2596_vm2  ;;  %v268_v19 = vand.u32 127, %v267_v18  ;;  %vm382_vm4 = vcmask 89088   ;;  %v2597_v21 = vmov 0.0   ;;  %s3402_s26 = sld [smem:[#allocation42_spill]] }
 0x12a   :  { %2036 = vmatprep.subr.bf16.mxu0 %v2035_v4  ;;  %v762_v9 = vld [vmem:[#allocation13] sm:$0xff]  ;;  %v2039_v11 = vpack.c.bf16 %v381_v8, %v380_v7  ;;  %v763_v13 = vld [vmem:[#allocation13 + $0x8] sm:$0x7]  ;;  %v378_v23 = vld [vmem:[#allocation7 + $0x10] sm:$0xff]  ;;  %s3403_s0 = sld [smem:[#allocation38_spill]]  ;;  %vm468_vm7 = vcmask 261120  }
 0x12b   :  { %2038 = vmatpush3.bf16.msra.mxu0 %v2035_v4  ;;  %v2069_v14 = vpack.c.bf16 %v763_v13, %v762_v9  ;;  %v376_v15 = vld [vmem:[#allocation7] sm:$0xff]  ;;  %v377_v16 = vld [vmem:[#allocation7 + $0x8] sm:$0xff]  ;;  %v379_v24 = vld [vmem:[#allocation7 + $0x18] sm:$0xff]  ;;  %s3404_s7 = sld [smem:[#allocation41_spill]]  ;;  %vm574_vm8 = vcmask 392192   ;;  %v2598_v63 = vmov 0.0|0.0  }
 0x12c   :  { %2041 = vmatprep.subr.msk.bf16.mxu1 %vm2975_vm3, %v2039_v11  ;;  %v2045_v17 = vpack.c.bf16 %v377_v16, %v376_v15  ;;  %v2049_v26 = vpack.c.bf16 %v379_v24, %v378_v23  ;;  %v672_v44 = vld [vmem:[#allocation10] sm:$0xff]  ;;  %v673_v45 = vld [vmem:[#allocation10 + $0x8] sm:$0xff]  ;;  %v758_v54 = vld [vmem:[#allocation11] sm:$0xff]  ;;  %vm2599_vm9 = vmmov 0   ;;  %s3405_s20 = sld [smem:[#allocation43_spill]]  ;;  %vm931_vm10 = vcmask 1041409  }
 0x12d   :  { %2071 = vmatprep.subr.msk.bf16.mxu0 %vm2975_vm3, %v2069_v14  ;;  %2044 = vmatpush3.bf16.msk.msra.mxu1 %vm2975_vm3, %v2039_v11  ;;  %v2065_v46 = vpack.c.bf16 %v673_v45, %v672_v44  ;;  %v759_v55 = vld [vmem:[#allocation11 + $0x8] sm:$0xff]  ;;  %v760_v57 = vld [vmem:[#allocation11 + $0x10] sm:$0xff]  ;;  %v761_v58 = vld [vmem:[#allocation11 + $0x18] sm:$0xff]  ;;  %vm1070_vm11 = vcmask 785408   ;;  %s3406_s25 = sld [smem:[#allocation45_spill]]  ;;  %vm1788_vm12 = vcmask 1043459  }
 0x12e   :  { %v265_v5 = vld [vmem:[%s3399_s27] sm:$0xff]  ;;  %v266_v6 = vld [vmem:[%s3399_s27 + $0x8] sm:$0xff]  ;;  %1926 = vmatmul.mubr.msk.f32.vlgmr.msra.gmra.mrb[0].mxu0 %vm292_vm0, %v2973_v10  ;;  %2046 = vmatprep.subr.bf16.mxu1 %v2045_v17  ;;  %v2075_v56 = vpack.c.bf16 %v759_v55, %v758_v54  ;;  %v2079_v59 = vpack.c.bf16 %v761_v58, %v760_v57  ;;  %v923_v60 = vld [vmem:[#allocation14] sm:$0xff]  ;;  %vm1795_vm13 = vcmask 1041408   ;;  %vm1796_vm14 = vcmask 125954   ;;  %s2602_s12 = smov [#allocation25]  }
 0x12f   :  { %270 = vperm.xlu0 %2228, %v265_v5   ;;  %2074 = vmatpush3.bf16.msk.msra.mxu0 %vm2975_vm3, %v2069_v14  ;;  %v561_v28 = vld [vmem:[%s3402_s26] sm:$0xff]  ;;  %v562_v29 = vld [vmem:[%s3402_s26 + $0x8] sm:$0xff]  ;;  %v563_v36 = vld [vmem:[%s3402_s26 + $0x10] sm:$0xff]  ;;  %vm1790_vm15 = vcmask 1045509  }
 0x130   :  { %v2053_v30 = vpack.c.bf16 %v562_v29, %v561_v28  ;;  %v1823_v31 = vld [vmem:[%s3403_s0] ss:$0 sm:$0xff]  ;;  %v564_v37 = vld [vmem:[%s3402_s26 + $0x18] sm:$0xff]  ;;  %v566_v42 = vld [vmem:[%s3402_s26 + $0x28] sm:$0xff]  ;;  %2076 = vmatprep.subr.bf16.mxu0 %v2075_v56 }
 0x131   :  { %v2057_v40 = vpack.c.bf16 %v564_v37, %v563_v36  ;;  %v565_v41 = vld [vmem:[%s3402_s26 + $0x20] sm:$0xff]  ;;  %v924_v61 = vld [vmem:[#allocation14 + $0x8] sm:$0xff]  ;;  %v926_v1 = vld [vmem:[#allocation14 + $0x18] sm:$0xff]  ;;  %s1805_s26 = sshll.u32 %s2602_s12, 4  ;;  %s1806_s26 = int_to_ptr.vmem [resolvable:$true] %s1805_s26 }
 0x132   :  { %v2061_v43 = vpack.c.bf16 %v566_v42, %v565_v41  ;;  %v1831_v47 = vld [vmem:[%s3404_s7] ss:$0 sm:$0xff]  ;;  %v2084_v62 = vpack.c.bf16 %v924_v61, %v923_v60  ;;  %v927_v4 = vld [vmem:[#allocation14 + $0x20] sm:$0xff]  ;;  %v928_v5 = vld [vmem:[#allocation14 + $0x28] sm:$0xff]  ;;  %s2537_s11 = scalar_lea.vmem %s1806_s26, 64  ;;  %p2542_p1 = scmp.lt.s32.totalorder %s1806_s26, %s1806_s26 }
 0x133   :  { %273 = vperm.xlu0 %2228, %v266_v6   ;;  %v925_v0 = vld [vmem:[#allocation14 + $0x10] sm:$0xff]  ;;  %v2090_v6 = vpack.c.bf16 %v928_v5, %v927_v4  ;;  %v1169_v8 = vld [vmem:[#allocation19 + $0x8] sm:$0xff]  ;;  %v1254_v60 = vld [vmem:[#allocation22] sm:$0xff]  ;;  %p2538_p0 = scmp.ne.s32.totalorder %s1806_s26, %s2537_s11  ;;  %p2543_p2 = scmp.lt.s32.totalorder %s2537_s11, %s2537_s11 }
 0x134   :  { %v2087_v2 = vpack.c.bf16 %v926_v1, %v925_v0  ;;  %v1168_v7 = vld [vmem:[#allocation19] sm:$0xff]  ;;  %v1832_v11 = vld [vmem:[%s3405_s20] ss:$0 sm:$0xff]  ;;  %v1057_v58 = vld [vmem:[%s3363_s15 + $0x30] sm:$0xff] }
 0x135   :  { %v2116_v9 = vpack.c.bf16 %v1169_v8, %v1168_v7  ;;  %v1263_v42 = vld [vmem:[#allocation23 + $0x8] sm:$0xff]  ;;  %v1261_v1 = vld [vmem:[#allocation22 + $0x38] sm:$0xff]  ;;  %v1260_v8 = vld [vmem:[#allocation22 + $0x30] sm:$0xff]  ;;  %p2544_p3 = por %p2543_p2, %p2542_p1 }
 0x136   :  { %v1255_v55 = vld [vmem:[#allocation22 + $0x8] sm:$0xff]  ;;  %v1060_v5 = vld [vmem:[%s3363_s15 + $0x48] sm:$0xff]  ;;  %vm1797_vm1 = vmor %vm1796_vm14, %vm1795_vm13 }
 0x137   :  { %v1259_v0 = vld [vmem:[#allocation22 + $0x28] sm:$0xff]  ;;  %p2545_p4 = pnand %p2544_p3, %p2538_p0 }
 0x138   :  { %v1059_v4 = vld [vmem:[%s3363_s15 + $0x40] sm:$0xff] }
 0x139   :  { %v2108_v7 = vpack.c.bf16 %v1060_v5, %v1059_v4  ;;  %v1451_v4 = vld [vmem:[%s3369_s21 + $0x98] sm:$0xff] }
 0x1ae   :  { %v271_v20 = vpop.permute.xlu0 %270 }
 0x1af   :  { %vm275_vm5 = vcmp.eq.s32.totalorder %v271_v20, %v268_v19 }
 0x1b0   :  { %v2991_v22 = vsel %vm275_vm5, 1.0, %v2597_v21 }
 0x1b1   :  { %1932 = vmatprep.mubr.msk.f32.mxu1 %vm382_vm4, %v2991_v22  ;;  %1972 = vmatprep.mubr.msk.f32.mxu0 %vm382_vm4, %v2991_v22 }
 0x1b2   :  { %v274_v25 = vpop.permute.xlu0 %273 }
 0x1b3   :  { %vm276_vm6 = vcmp.eq.s32.totalorder %v274_v25, %v268_v19 }
 0x1b4   :  { %v2998_v27 = vsel %vm276_vm6, 1.0, %v2597_v21 }
 0x1b5   :  { %1933 = vmatmul.mubr.msk.f32.vlgmr.msra.gmra.mrb[0].mxu1 %vm382_vm4, %v2998_v27  ;;  %1973 = vmatmul.mubr.msk.f32.vlgmr.msra.gmra.mrb[2].mxu0 %vm382_vm4, %v2998_v27 }
 0x1b6   :  { %2048 = vmatpush3.bf16.msra.mxu1 %v2045_v17  ;;  %2078 = vmatpush3.bf16.msra.mxu0 %v2075_v56  ;;  %v1835_v17 = vld [vmem:[%s3358_s10] ss:$0 sm:$0xff]  ;;  %v1257_v56 = vld [vmem:[#allocation22 + $0x18] sm:$0xff] }
 0x1b7   :  { %2050 = vmatprep.subr.bf16.mxu1 %v2049_v26  ;;  %2080 = vmatprep.subr.bf16.mxu0 %v2079_v59  ;;  %v2126_v57 = vpack.c.bf16 %v1257_v56, %v1255_v55  ;;  %v1443_v55 = vld [vmem:[%s3369_s21 + $0x58] sm:$0xff] }
 0x1ba   :  { %2052 = vmatpush3.bf16.msra.mxu1 %v2049_v26  ;;  %2082 = vmatpush3.bf16.msra.mxu0 %v2079_v59  ;;  %v1058_v59 = vld [vmem:[%s3363_s15 + $0x38] sm:$0xff] }
 0x1bb   :  { %2054 = vmatprep.subr.bf16.mxu1 %v2053_v30  ;;  %v2104_v61 = vpack.c.bf16 %v1058_v59, %v1057_v58  ;;  %v1442_v58 = vld [vmem:[%s3369_s21 + $0x50] sm:$0xff] }
 0x201   :  { %v1927_v32 = vpop.f32.mrb[0].mxu0 }
 0x202   :  { %v371_v33 = vadd.f32 %v1927_v32, %v1823_v31  ;;  %v365_v34 = vpop.f32.mrb[1].mxu0 }
 0x203   :  { %v366_v35 = vadd.f32 %v1823_v31, %v365_v34 }
 0x204   :  { %v375_v39 = vmax.f32 %v371_v33, 0.0 }
 0x205   :  { %v374_v38 = vmax.f32 %v366_v35, 0.0 }
 0x207   :  { %1943 = vmatprep.mubr.msk.f32.mxu1 %vm468_vm7, %v374_v38 }
 0x208   :  { %1944 = vmatmul.mubr.msk.f32.vlgmr.msra.gmra.mrb[0].mxu1 %vm468_vm7, %v375_v39 }
 0x209   :  { %2056 = vmatpush3.bf16.msra.mxu1 %v2053_v30 }
 0x20a   :  { %2058 = vmatprep.subr.bf16.mxu1 %v2057_v40 }
 0x20d   :  { %2060 = vmatpush3.bf16.msra.mxu1 %v2057_v40 }
 0x20e   :  { %2062 = vmatprep.subr.bf16.mxu1 %v2061_v43 }
 0x211   :  { %2064 = vmatpush3.bf16.msra.mxu1 %v2061_v43  ;;  %v1265_v43 = vld [vmem:[#allocation23 + $0x18] sm:$0x7] }
 0x212   :  { %2066 = vmatprep.subr.bf16.mxu1 %v2065_v46 }
 0x2db   :  { %v1945_v48 = vpop.f32.mrb[0].mxu1 }
 0x2dc   :  { %v558_v49 = vadd.f32 %v1945_v48, %v1831_v47  ;;  %v541_v50 = vpop.f32.mrb[1].mxu1  ;;  %v1264_v48 = vld [vmem:[#allocation23 + $0x10] sm:$0x7] }
 0x2dd   :  { %v557_v51 = vadd.f32 %v1831_v47, %v541_v50  ;;  %v1262_v47 = vld [vmem:[#allocation23] sm:$0xff] }
 0x2de   :  { %v560_v53 = vmax.f32 %v558_v49, 0.0  ;;  %v2123_v50 = vpack.c.bf16 %v1264_v48, %v1262_v47  ;;  %v1433_v48 = vld [vmem:[%s3369_s21 + $0x8] sm:$0xff] }
 0x2df   :  { %v559_v52 = vmax.f32 %v557_v51, 0.0  ;;  %v1055_v51 = vld [vmem:[%s3363_s15 + $0x20] sm:$0xff] }
 0x2e1   :  { %1958 = vmatprep.mubr.msk.f32.mxu1 %vm574_vm8, %v559_v52 }
 0x2e2   :  { %1959 = vmatmul.mubr.msk.f32.vlgmr.msra.gmra.mrb[2].mxu1 %vm574_vm8, %v560_v53  ;;  %v1056_v53 = vld [vmem:[%s3363_s15 + $0x28] sm:$0xff] }
 0x2e3   :  { %2068 = vmatpush3.bf16.msra.mxu1 %v2065_v46  ;;  %1965 = vmatprep.mubr.msk.f32.mxu1 %vm292_vm0, %v2963_v3  ;;  %v2120_v46 = vpack.c.bf16 %v1265_v43, %v1263_v42  ;;  %v2100_v54 = vpack.c.bf16 %v1056_v53, %v1055_v51  ;;  %v1436_v51 = vld [vmem:[%s3369_s21 + $0x20] sm:$0xff] }
 0x2e4   :  { %2083 = vmatprep.subr.bf16.mxu1 %v2598_v63 }
 0x2e6   :  { %1966 = vmatmul.mubr.msk.f32.vlgmr.msra.gmra.mrb[4].mxu1 %vm292_vm0, %v2973_v10 }
 0x2e7   :  { %2085 = vmatpush3.bf16.msra.mxu1 %v2084_v62  ;;  %1998 = vmatprep.mubr.msk.f32.mxu1 %vm2599_vm9, %v2597_v21  ;;  %v1256_v62 = vld [vmem:[#allocation22 + $0x10] sm:$0xff] }
 0x2e8   :  { %2086 = vmatprep.subr.bf16.mxu1 %v2598_v63 }
 0x2eb   :  { %2088 = vmatpush3.bf16.msra.mxu1 %v2087_v2  ;;  %v2130_v2 = vpack.c.bf16 %v1261_v1, %v1259_v0  ;;  %v1446_v0 = vld [vmem:[%s3369_s21 + $0x70] sm:$0xff] }
 0x2ec   :  { %2089 = vmatprep.subr.bf16.mxu1 %v2598_v63  ;;  %v2128_v63 = vpack.c.bf16 %v1256_v62, %v1254_v60  ;;  %v1445_v60 = vld [vmem:[%s3369_s21 + $0x68] sm:$0xff] }
 0x2ef   :  { %2091 = vmatpush3.bf16.msra.mxu1 %v2090_v6  ;;  %v1258_v6 = vld [vmem:[#allocation22 + $0x20] sm:$0xff] }
 0x2f0   :  { %2117 = vmatprep.subr.bf16.mxu1 %v2116_v9 }
 0x3b5   :  { %v1960_v13 = vpop.f32.mrb[2].mxu1 }
 0x3b6   :  { %v653_v14 = vadd.f32 %v1960_v13, %v1832_v11  ;;  %v647_v15 = vpop.f32.mrb[3].mxu1  ;;  %v1062_v13 = vld [vmem:[%s3363_s15 + $0x58] sm:$0xff] }
 0x3b7   :  { %v648_v16 = vadd.f32 %v1832_v11, %v647_v15  ;;  %v1061_v11 = vld [vmem:[%s3363_s15 + $0x50] sm:$0xff]  ;;  %v2600_v15 = vmov 1966171168  }
 0x3b8   :  { %v657_v19 = vmax.f32 %v653_v14, 0.0  ;;  %v2112_v14 = vpack.c.bf16 %v1062_v13, %v1061_v11  ;;  %v1455_v11 = vld [vmem:[%s3369_s21 + $0xb8] sm:$0xff] }
 0x3b9   :  { %v656_v20 = vmax.f32 %v648_v16, 0.0  ;;  %v1967_v23 = vpop.f32.mrb[4].mxu1  ;;  %v1007_v16 = vunpack.c.l.s4 %v2600_v15  ;;  %v1454_v15 = vld [vmem:[%s3369_s21 + $0xb0] sm:$0xff] }
 0x3ba   :  { %v665_v24 = vsel %vm574_vm8, %v657_v19, 0.0  ;;  %v753_v25 = vadd.f32 %v1967_v23, %v1835_v17  ;;  %v747_v26 = vpop.f32.mrb[5].mxu1  ;;  %v3101_v23 = vshrl.u32 %v267_v18, 7 }
 0x3bb   :  { %v666_v28 = vrot.slane %v665_v24, 4  ;;  %v658_v29 = vsel %vm574_vm8, %v656_v20, 0.0  ;;  %v748_v30 = vadd.f32 %v1835_v17, %v747_v26  ;;  %v1008_v20 = vunpack.c.0.s8 %v1007_v16 }
 0x3bc   :  { %v659_v31 = vrot.slane %v658_v29, 4  ;;  %v757_v32 = vmax.f32 %v753_v25, 0.0  ;;  %v3107_v26 = vsub.s32 0, %v3101_v23 }
 0x3bd   :  { %v667_v33 = vadd.f32 %v666_v28, %v665_v24  ;;  %v756_v34 = vmax.f32 %v748_v30, 0.0  ;;  %v3104_v24 = vsub.s32 %v1008_v20, %v3101_v23  ;;  %v1601_v20 = vld [vmem:[%s3371_s23] sm:$0xff] }
 0x3be   :  { %v660_v35 = vadd.f32 %v659_v31, %v658_v29 }
 0x3bf   :  { %v668_v36 = vrot.slane %v667_v33, 2  ;;  %1983 = vmatprep.mubr.msk.f32.mxu0 %vm468_vm7, %v756_v34 }
 0x3c0   :  { %v661_v37 = vrot.slane %v660_v35, 2  ;;  %1984 = vmatmul.mubr.msk.f32.vlgmr.msra.gmra.mrb[2].mxu0 %vm468_vm7, %v757_v32  ;;  %v1848_v32 = vld [vmem:[#allocation20] ss:$0 sm:$0xff] }
 0x3c1   :  { %v669_v38 = vadd.f32 %v668_v36, %v667_v33 }
 0x3c2   :  { %v662_v39 = vadd.f32 %v661_v37, %v660_v35 }
 0x3c3   :  { %v670_v40 = vrot.slane %v669_v38, 1 }
 0x3c4   :  { %v663_v41 = vrot.slane %v662_v39, 1 }
 0x3c5   :  { %v671_v44 = vadd.f32 %v670_v40, %v669_v38  ;;  %v1844_v38 = vld [vmem:[#allocation16] ss:$0 sm:$0xff] }
 0x3c6   :  { %v664_v45 = vadd.f32 %v663_v41, %v662_v39 }
 0x3c8   :  { %v932_v49 = vsel %vm931_vm10, %v671_v44, %v664_v45 }
 0x3c9   :  { %1999 = vmatmul.mubr.msk.f32.vlgmr.msra.gmra.mrb[6].mxu1 %vm574_vm8, %v932_v49  ;;  %v1435_v49 = vld [vmem:[%s3369_s21 + $0x18] sm:$0xff] }
 0x3ca   :  { %2119 = vmatpush3.bf16.msra.mxu1 %v2116_v9  ;;  %2032 = vmatprep.mubr.msk.f32.mxu1 %vm292_vm0, %v2963_v3  ;;  %v1051_v3 = vld [vmem:[%s3363_s15] sm:$0xff]  ;;  %v2132_v9 = vpack.c.bf16 %v1260_v8, %v1258_v6 }
 0x3cb   :  { %2122 = vmatprep.subr.msk.bf16.mxu1 %vm2975_vm3, %v2120_v46  ;;  %v1448_v6 = vld [vmem:[%s3369_s21 + $0x80] sm:$0xff] }
 0x3cd   :  { %2033 = vmatmul.mubr.msk.f32.vlgmr.msra.gmra.mrb[8].mxu1 %vm292_vm0, %v2973_v10  ;;  %v1052_v10 = vld [vmem:[%s3363_s15 + $0x8] sm:$0xff] }
 0x3ce   :  { %2125 = vmatpush1.bf16.msk.msra.mxu1 %vm2975_vm3, %v2123_v50  ;;  %1336 = vmatprep.mubr.f32.mxu1 %v2597_v21  ;;  %v2092_v12 = vpack.c.bf16 %v1052_v10, %v1051_v3  ;;  %v2134_v50 = vpack.c.bf16 %v1435_v49, %v1433_v48  ;;  %v1432_v3 = vld [vmem:[%s3369_s21] sm:$0xff]  ;;  %v1434_v10 = vld [vmem:[%s3369_s21 + $0x10] sm:$0xff] }
 0x3cf   :  { %2127 = vmatprep.subr.bf16.mxu1 %v2126_v57  ;;  %v1440_v57 = vld [vmem:[%s3369_s21 + $0x40] sm:$0xff] }
 0x3d0   :  { %2093 = vmatprep.subr.bf16.mxu0 %v2092_v12  ;;  %v2144_v59 = vpack.c.bf16 %v1442_v58, %v1440_v57 }
 0x3d1   :  { %1853 = vmatmul.mubr.msk.f32.vlgmr.msra.gmra.mrb[10].mxu1 %vm382_vm4, %v2991_v22  ;;  %2095 = vmatpush3.bf16.msra.mxu0 %v2092_v12  ;;  %v1053_v22 = vld [vmem:[%s3363_s15 + $0x10] sm:$0xff]  ;;  %v2136_v12 = vpack.c.bf16 %v1434_v10, %v1432_v3 }
 0x3d2   :  { %1342 = vmatprep.mubr.f32.mxu1 %v2597_v21  ;;  %2129 = vmatpush1.bf16.msra.mxu1 %v2128_v63  ;;  %v1444_v63 = vld [vmem:[%s3369_s21 + $0x60] sm:$0xff]  ;;  %v1619_v3 = vld [vmem:[%s3371_s23 + $0x90] sm:$0xff] }
 0x3d3   :  { %2131 = vmatprep.subr.bf16.mxu1 %v2130_v2  ;;  %v2148_v1 = vpack.c.bf16 %v1446_v0, %v1444_v63  ;;  %v1449_v2 = vld [vmem:[%s3369_s21 + $0x88] sm:$0xff] }
 0x3d4   :  { %v2150_v5 = vpack.c.bf16 %v1451_v4, %v1449_v2 }
 0x3d5   :  { %1854 = vmatmul.mubr.msk.f32.gmra.mrb[12].mxu1 %vm382_vm4, %v2998_v27  ;;  %v1054_v27 = vld [vmem:[%s3363_s15 + $0x18] sm:$0xff] }
 0x3d6   :  { %1419 = vmatprep.mubr.f32.mxu1 %v2597_v21  ;;  %v2096_v52 = vpack.c.bf16 %v1054_v27, %v1053_v22  ;;  %2133 = vmatpush1.bf16.msra.mxu1 %v2132_v9  ;;  %v1439_v22 = vld [vmem:[%s3369_s21 + $0x38] sm:$0xff]  ;;  %v1453_v9 = vld [vmem:[%s3369_s21 + $0xa8] sm:$0xff] }
 0x3d7   :  { %2135 = vmatprep.subr.bf16.mxu1 %v2134_v50  ;;  %v2154_v13 = vpack.c.bf16 %v1455_v11, %v1453_v9  ;;  %v1617_v50 = vld [vmem:[%s3371_s23 + $0x80] sm:$0xff]  ;;  %v1622_v11 = vld [vmem:[%s3371_s23 + $0xa8] sm:$0xff] }
 0x3d8   :  { %2097 = vmatprep.subr.bf16.mxu0 %v2096_v52  ;;  %v2176_v10 = vpack.c.bf16 %v1619_v3, %v1617_v50 }
 0x3d9   :  { %2099 = vmatpush3.bf16.msra.mxu0 %v2096_v52  ;;  %v1438_v52 = vld [vmem:[%s3369_s21 + $0x30] sm:$0xff] }
 0x3da   :  { %2101 = vmatprep.subr.bf16.mxu0 %v2100_v54  ;;  %v2140_v53 = vpack.c.bf16 %v1438_v52, %v1436_v51 }
 0x3dd   :  { %2103 = vmatpush3.bf16.msra.mxu0 %v2100_v54  ;;  %v1441_v54 = vld [vmem:[%s3369_s21 + $0x48] sm:$0xff] }
 0x3de   :  { %2105 = vmatprep.subr.bf16.mxu0 %v2104_v61  ;;  %v2142_v56 = vpack.c.bf16 %v1443_v55, %v1441_v54 }
 0x3e1   :  { %2107 = vmatpush3.bf16.msra.mxu0 %v2104_v61  ;;  %v1447_v61 = vld [vmem:[%s3369_s21 + $0x78] sm:$0xff] }
 0x3e2   :  { %2109 = vmatprep.subr.bf16.mxu0 %v2108_v7  ;;  %v2146_v62 = vpack.c.bf16 %v1447_v61, %v1445_v60 }
 0x3e5   :  { %2111 = vmatpush3.bf16.msra.mxu0 %v2108_v7  ;;  %v1450_v7 = vld [vmem:[%s3369_s21 + $0x90] sm:$0xff] }
 0x3e6   :  { %2113 = vmatprep.subr.bf16.mxu0 %v2112_v14  ;;  %v2152_v8 = vpack.c.bf16 %v1450_v7, %v1448_v6 }
 0x3e9   :  { %2115 = vmatpush3.bf16.msra.mxu0 %v2112_v14  ;;  %v1452_v14 = vld [vmem:[%s3369_s21 + $0xa0] sm:$0xff] }
 0x3ea   :  { %v2156_v16 = vpack.c.bf16 %v1454_v15, %v1452_v14  ;;  %v1621_v15 = vld [vmem:[%s3371_s23 + $0xa0] sm:$0xff] }
 0x493   :  { %v1985_v17 = vpop.f32.mrb[2].mxu0 }
 0x494   :  { %v914_v19 = vpop.f32.mrb[3].mxu0 }
 0x49c   :  { %v1001_v25 = vpop.f32.mrb[6].mxu1 }
 0x49d   :  { %v1012_v28 = vrot.slane %v1001_v25, %v3104_v24  ;;  %v2000_v29 = vpop.f32.mrb[7].mxu1 }
 0x49e   :  { %v1606_v29 = vld [vmem:[%s3371_s23 + $0x28] sm:$0xff] }
 0x49f   :  { %v1013_v30 = vcombine.high %v1012_v28, %v1012_v28  ;;  %v1020_v31 = vrot.slane %v1012_v28, %v3104_v24  ;;  %v1603_v28 = vld [vmem:[%s3371_s23 + $0x10] sm:$0xff] }
 0x4a0   :  { %v2034_v33 = vpop.f32.mrb[8].mxu1 }
 0x4a1   :  { %v1027_v34 = vrot.slane %v1013_v30, %v3104_v24  ;;  %v1031_v18 = vrot.slane %v1020_v31, %v3107_v26  ;;  %v1243_v35 = vpop.f32.mrb[9].mxu1  ;;  %v1249_v36 = vadd.f32 %v2034_v33, %v1848_v32  ;;  %v1608_v30 = vld [vmem:[%s3371_s23 + $0x38] sm:$0xff]  ;;  %v2160_v31 = vpack.c.bf16 %v1603_v28, %v1601_v20  ;;  %v1605_v33 = vld [vmem:[%s3371_s23 + $0x20] sm:$0xff] }
 0x4a2   :  { %v1244_v37 = vadd.f32 %v1848_v32, %v1243_v35  ;;  %v2162_v32 = vpack.c.bf16 %v1608_v30, %v1606_v29  ;;  %v1612_v35 = vld [vmem:[%s3371_s23 + $0x58] sm:$0xff]  ;;  %v1625_v28 = vld [vmem:[%s3371_s23 + $0xc0] sm:$0xff]  ;;  %v1627_v29 = vld [vmem:[%s3371_s23 + $0xd0] sm:$0xff] }
 0x4a3   :  { %v1035_v39 = vrot.slane %v1027_v34, %v3107_v26  ;;  %v1038_v40 = vadd.f32 %v1031_v18, %v914_v19  ;;  %v1253_v44 = vmax.f32 %v1249_v36, 0.0  ;;  %v1604_v19 = vld [vmem:[%s3371_s23 + $0x18] sm:$0xff]  ;;  %v1607_v34 = vld [vmem:[%s3371_s23 + $0x30] sm:$0xff]  ;;  %v1610_v18 = vld [vmem:[%s3371_s23 + $0x48] sm:$0xff]  ;;  %v2184_v30 = vpack.c.bf16 %v1627_v29, %v1625_v28 }
 0x4a4   :  { %v1252_v41 = vmax.f32 %v1244_v37, 0.0  ;;  %v2164_v36 = vpack.c.bf16 %v1607_v34, %v1605_v33  ;;  %v2166_v37 = vpack.c.bf16 %v1612_v35, %v1610_v18  ;;  %v1628_v20 = vld [vmem:[%s3371_s23 + $0xd8] sm:$0xff]  ;;  %v1629_v34 = vld [vmem:[%s3371_s23 + $0xe0] sm:$0xff]  ;;  %v1631_v18 = vld [vmem:[%s3371_s23 + $0xf0] sm:$0xff] }
 0x4a5   :  { %v1039_v42 = vadd.f32 %v1985_v17, %v1035_v39  ;;  %v1047_v43 = vadd.f32 %v1844_v38, %v1038_v40  ;;  %v1602_v17 = vld [vmem:[%s3371_s23 + $0x8] sm:$0xff]  ;;  %v1611_v39 = vld [vmem:[%s3371_s23 + $0x50] sm:$0xff]  ;;  %v2188_v35 = vpack.c.bf16 %v1631_v18, %v1629_v34 }
 0x4a6   :  { %1855 = vmatmul.mubr.msk.f32.vlgmr.msra.gmra.mrb[10].mxu1 %vm468_vm7, %v1252_v41  ;;  %v2158_v25 = vpack.c.bf16 %v1604_v19, %v1602_v17  ;;  %v1614_v40 = vld [vmem:[%s3371_s23 + $0x68] sm:$0xff]  ;;  %v1616_v41 = vld [vmem:[%s3371_s23 + $0x78] sm:$0xff] }
 0x4a7   :  { %v1048_v45 = vadd.f32 %v1844_v38, %v1039_v42  ;;  %v1049_v46 = vmax.f32 %v1047_v43, 0.0  ;;  %1425 = vmatprep.mubr.f32.mxu1 %v2597_v21  ;;  %2137 = vmatpush1.bf16.msra.mxu1 %v2136_v12  ;;  %v1609_v38 = vld [vmem:[%s3371_s23 + $0x40] sm:$0xff]  ;;  %v2170_v43 = vpack.c.bf16 %v1616_v41, %v1614_v40  ;;  %v1626_v19 = vld [vmem:[%s3371_s23 + $0xc8] sm:$0xff]  ;;  %v1635_v40 = vld [vmem:[%s3371_s23 + $0x110] sm:$0xff] }
 0x4a8   :  { %2159 = vmatprep.subr.bf16.mxu0 %v2158_v25  ;;  %v2168_v42 = vpack.c.bf16 %v1611_v39, %v1609_v38  ;;  %v2182_v25 = vpack.c.bf16 %v1628_v20, %v1626_v19  ;;  %v1633_v38 = vld [vmem:[%s3371_s23 + $0x100] sm:$0xff] }
 0x4a9   :  { %v1050_v47 = vmax.f32 %v1048_v45, 0.0  ;;  %2025 = vmatprep.mubr.msk.f32.mxu0 %vm1070_vm11, %v1049_v46  ;;  %v1615_v45 = vld [vmem:[%s3371_s23 + $0x70] sm:$0xff]  ;;  %v1618_v46 = vld [vmem:[%s3371_s23 + $0x88] sm:$0xff]  ;;  %v2192_v41 = vpack.c.bf16 %v1635_v40, %v1633_v38  ;;  %v2601_v38 = vmov 1983009808  }
 0x4aa   :  { %1856 = vmatmul.mubr.msk.f32.gmra.mrb[12].mxu1 %vm468_vm7, %v1253_v44  ;;  %v1613_v44 = vld [vmem:[%s3371_s23 + $0x60] sm:$0xff] }
 0x4ab   :  { %2026 = vmatmul.mubr.msk.f32.vlgmr.msra.gmra.mrb[4].mxu0 %vm1070_vm11, %v1050_v47  ;;  %1525 = vmatprep.mubr.f32.mxu1 %v2597_v21  ;;  %v1437_v21 = vld [vmem:[%s3369_s21 + $0x28] sm:$0xff]  ;;  %v1620_v47 = vld [vmem:[%s3371_s23 + $0x98] sm:$0xff]  ;;  %v2172_v48 = vpack.c.bf16 %v1615_v45, %v1613_v44 }
 0x4ac   :  { %v2138_v27 = vpack.c.bf16 %v1439_v22, %v1437_v21  ;;  %2161 = vmatpush1.bf16.msra.mxu0 %v2160_v31  ;;  %v2174_v49 = vpack.c.bf16 %v1620_v47, %v1618_v46  ;;  %v1845_v22 = vld [vmem:[#allocation17] ss:$0 sm:$0xff]  ;;  %v1630_v31 = vld [vmem:[%s3371_s23 + $0xe8] sm:$0xff]  ;;  %v1563_v46 = vsub.s32 1, %v3101_v23  ;;  %v1581_v47 = vld [vmem:[%s3370_s22] sm:$0x3] }
 0x4ad   :  { %2163 = vmatprep.subr.bf16.mxu0 %v2162_v32  ;;  %v1632_v32 = vld [vmem:[%s3371_s23 + $0xf8] sm:$0xff] }
 0x4ae   :  { %2139 = vmatprep.subr.bf16.mxu1 %v2138_v27  ;;  %v2186_v33 = vpack.c.bf16 %v1632_v32, %v1630_v31  ;;  %v1590_v50 = vrot.slane %v1581_v47, %v1563_v46 }
 0x4af   :  { %2141 = vmatpush1.bf16.msra.mxu1 %v2140_v53 }
 0x4b0   :  { %2143 = vmatprep.subr.bf16.mxu1 %v2142_v56  ;;  %2165 = vmatpush1.bf16.msra.mxu0 %v2164_v36  ;;  %v1634_v36 = vld [vmem:[%s3371_s23 + $0x108] sm:$0xff] }
 0x4b1   :  { %2167 = vmatprep.subr.bf16.mxu0 %v2166_v37  ;;  %v1636_v37 = vld [vmem:[%s3371_s23 + $0x118] sm:$0xff] }
 0x4b2   :  { %v2190_v39 = vpack.c.bf16 %v1636_v37, %v1634_v36 }
 0x4b3   :  { %2145 = vmatpush1.bf16.msra.mxu1 %v2144_v59 }
 0x4b4   :  { %2147 = vmatprep.subr.bf16.mxu1 %v2146_v62  ;;  %2169 = vmatpush1.bf16.msra.mxu0 %v2168_v42 }
 0x4b5   :  { %2171 = vmatprep.subr.bf16.mxu0 %v2170_v43 }
 0x4b7   :  { %2149 = vmatpush1.bf16.msra.mxu1 %v2148_v1 }
 0x4b8   :  { %2151 = vmatprep.subr.bf16.mxu1 %v2150_v5  ;;  %2173 = vmatpush1.bf16.msra.mxu0 %v2172_v48 }
 0x4b9   :  { %2175 = vmatprep.subr.bf16.mxu0 %v2174_v49 }
 0x4bb   :  { %2153 = vmatpush1.bf16.msra.mxu1 %v2152_v8 }
 0x4bc   :  { %2155 = vmatprep.subr.bf16.mxu1 %v2154_v13  ;;  %2177 = vmatpush1.bf16.msra.mxu0 %v2176_v10  ;;  %v1624_v13 = vld [vmem:[%s3371_s23 + $0xb8] sm:$0xff] }
 0x4bd   :  { %v2178_v14 = vpack.c.bf16 %v1624_v13, %v1622_v11 }
 0x4bf   :  { %2157 = vmatpush1.bf16.msra.mxu1 %v2156_v16  ;;  %v1623_v16 = vld [vmem:[%s3371_s23 + $0xb0] sm:$0xff]  ;;  %2179 = vmatprep.subr.bf16.mxu0 %v2178_v14 }
 0x4c0   :  { %v2180_v17 = vpack.c.bf16 %v1623_v16, %v1621_v15 }
 0x4c2   :  { %2181 = vmatpush1.bf16.msra.mxu0 %v2180_v17 }
 0x4c3   :  { %2183 = vmatprep.subr.bf16.mxu0 %v2182_v25 }
 0x4c6   :  { %2185 = vmatpush1.bf16.msra.mxu0 %v2184_v30 }
 0x4c7   :  { %2187 = vmatprep.subr.bf16.mxu0 %v2186_v33 }
 0x4ca   :  { %2189 = vmatpush1.bf16.msra.mxu0 %v2188_v35 }
 0x4cb   :  { %2191 = vmatprep.subr.bf16.mxu0 %v2190_v39  ;;  %v1768_v39 = vunpack.c.l.s4 %v2601_v38 }
 0x4ce   :  { %2193 = vmatpush1.bf16.msra.mxu0 %v2192_v41 }
 0x579   :  { %v3252_v12 = vpop.f32.mrb[10].mxu1 }
 0x57a   :  { %v3254_v21 = vpop.f32.mrb[11].mxu1 }
 0x57d   :  { %v3256_v27 = vpop.f32.mrb[12].mxu1 }
 0x57e   :  { %v2027_v51 = vpop.f32.mrb[4].mxu0  ;;  %v3258_v52 = vpop.f32.mrb[13].mxu1 }
 0x57f   :  { %v1149_v53 = vadd.f32 %v2027_v51, %v1845_v22  ;;  %v1143_v54 = vpop.f32.mrb[5].mxu0  ;;  %v1586_v51 = vrot.slane %v1581_v47, %v3107_v26  ;;  %v1769_v47 = vunpack.c.0.s8 %v1768_v39 }
 0x580   :  { %v1144_v55 = vadd.f32 %v1845_v22, %v1143_v54 }
 0x581   :  { %v1153_v56 = vmax.f32 %v1149_v53, 0.0 }
 0x582   :  { %v1152_v57 = vmax.f32 %v1144_v55, 0.0 }
 0x583   :  { %v1161_v58 = vsel %vm1070_vm11, %v1153_v56, 0.0 }
 0x584   :  { %v1162_v59 = vrot.slane %v1161_v58, 4  ;;  %v1154_v60 = vsel %vm1070_vm11, %v1152_v57, 0.0 }
 0x585   :  { %v1155_v61 = vrot.slane %v1154_v60, 4 }
 0x586   :  { %v1163_v62 = vadd.f32 %v1162_v59, %v1161_v58 }
 0x587   :  { %v1156_v63 = vadd.f32 %v1155_v61, %v1154_v60 }
 0x588   :  { %v1164_v0 = vrot.slane %v1163_v62, 2 }
 0x589   :  { %v1157_v1 = vrot.slane %v1156_v63, 2 }
 0x58a   :  { %v1165_v2 = vadd.f32 %v1164_v0, %v1163_v62 }
 0x58b   :  { %v1158_v4 = vadd.f32 %v1157_v1, %v1156_v63 }
 0x58c   :  { %v1166_v5 = vrot.slane %v1165_v2, 1 }
 0x58d   :  { %v1159_v6 = vrot.slane %v1158_v4, 1 }
 0x58e   :  { %v1167_v7 = vadd.f32 %v1166_v5, %v1165_v2 }
 0x58f   :  { %v1160_v8 = vadd.f32 %v1159_v6, %v1158_v4 }
 0x591   :  { %v1458_v9 = vsel %vm931_vm10, %v1167_v7, %v1160_v8 }
 0x592   :  { %1857 = vmatmul.mubr.msk.f32.vlgmr.msra.gmra.mrb[14].mxu1 %vm1070_vm11, %v1458_v9 }
 0x665   :  { %v1527_v42 = vpop.f32.mrb[14].mxu1 }
 0x666   :  { %v1529_v43 = vpop.f32.mrb[15].mxu1 }
 0x667   :  { %v1534_v44 = vcombine.low %v1527_v42, %v1529_v43 }
 0x669   :  { %v1541_v45 = vrot.slane %v1534_v44, %v3104_v24 }
 0x66b   :  { %v1542_v48 = vcombine.high %v1541_v45, %v1541_v45  ;;  %v1549_v49 = vrot.slane %v1541_v45, %v3104_v24 }
 0x66d   :  { %v1556_v3 = vrot.slane %v1542_v48, %v3104_v24  ;;  %v1560_v10 = vrot.slane %v1549_v49, %v3107_v26  ;;  %v1564_v22 = vrot.slane %v1549_v49, %v1563_v46 }
 0x66f   :  { %v1572_v53 = vrot.slane %v1556_v3, %v1563_v46  ;;  %v1577_v54 = vadd.f32 %v1560_v10, %v3252_v12  ;;  %v1578_v55 = vadd.f32 %v1564_v22, %v3254_v21  ;;  %v1568_v56 = vrot.slane %v1556_v3, %v3107_v26  ;;  %v1637_v21 = vld [vmem:[%s3406_s25] sm:$0x3] }
 0x670   :  { %v1646_v1 = vrot.slane %v1637_v21, %v1563_v46  ;;  %v1772_v3 = vsub.s32 %v1769_v47, %v3101_v23 }
 0x671   :  { %v1594_v57 = vadd.f32 %v1590_v50, %v1578_v55  ;;  %v1593_v58 = vadd.f32 %v1586_v51, %v1577_v54  ;;  %v1580_v59 = vadd.f32 %v1572_v53, %v3258_v52  ;;  %v1579_v60 = vadd.f32 %v1568_v56, %v3256_v27 }
 0x672   :  { %v1642_v52 = vrot.slane %v1637_v21, %v3107_v26 }
 0x673   :  { %v1598_v61 = vmax.f32 %v1594_v57, 0.0  ;;  %v1597_v24 = vmax.f32 %v1593_v58, 0.0  ;;  %v1596_v62 = vadd.f32 %v1590_v50, %v1580_v59  ;;  %v1595_v63 = vadd.f32 %v1586_v51, %v1579_v60 }
 0x675   :  { %1858 = vmatprep.mubr.msk.f32.mxu0 %vm292_vm0, %v1598_v61  ;;  %v1600_v0 = vmax.f32 %v1596_v62, 0.0  ;;  %v1599_v12 = vmax.f32 %v1595_v63, 0.0 }
 0x676   :  { %1720 = vmatmul.mubr.f32.vlgmr.msra.gmra.mrb[6].mxu0 %v1597_v24 }
 0x677   :  { %1859 = vmatprep.mubr.msk.f32.mxu0 %vm292_vm0, %v1600_v0 }
 0x67a   :  { %1726 = vmatmul.mubr.f32.gmra.mrb[8].mxu0 %v1599_v12 }
 0x749   :  { %v1721_v27 = vpop.f32.mrb[6].mxu0 }
 0x74a   :  { %v1722_v2 = vadd.f32 %v1721_v27, %v1642_v52  ;;  %v1723_v4 = vpop.f32.mrb[7].mxu0 }
 0x74b   :  { %v1724_v5 = vadd.f32 %v1723_v4, %v1646_v1 }
 0x74c   :  { %v1732_v6 = vmax.f32 %v1722_v2, 0.0 }
 0x74d   :  { %v1733_v7 = vmax.f32 %v1724_v5, 0.0  ;;  %v1727_v8 = vpop.f32.mrb[8].mxu0 }
 0x74e   :  { %v1736_v9 = vrot.slane %v1732_v6, 4  ;;  %v1728_v11 = vadd.f32 %v1727_v8, %v1642_v52  ;;  %v1729_v13 = vpop.f32.mrb[9].mxu0 }
 0x74f   :  { %v1742_v14 = vsel %vm292_vm0, %v1733_v7, 0.0  ;;  %v1730_v15 = vadd.f32 %v1729_v13, %v1646_v1 }
 0x750   :  { %v1737_v16 = vadd.f32 %v1736_v9, %v1732_v6  ;;  %v1743_v17 = vrot.slane %v1742_v14, 4  ;;  %v1734_v19 = vmax.f32 %v1728_v11, 0.0 }
 0x751   :  { %v1735_v20 = vmax.f32 %v1730_v15, 0.0 }
 0x752   :  { %v1738_v25 = vrot.slane %v1737_v16, 2  ;;  %v1744_v26 = vadd.f32 %v1743_v17, %v1742_v14  ;;  %v1749_v28 = vrot.slane %v1734_v19, 4 }
 0x753   :  { %v1755_v29 = vsel %vm292_vm0, %v1735_v20, 0.0  ;;  %vm1792_vm0 = vcmask 1047559  }
 0x754   :  { %v1739_v30 = vadd.f32 %v1738_v25, %v1737_v16  ;;  %v1745_v31 = vrot.slane %v1744_v26, 2  ;;  %v1750_v32 = vadd.f32 %v1749_v28, %v1734_v19  ;;  %v1756_v33 = vrot.slane %v1755_v29, 4 }
 0x756   :  { %v1740_v34 = vrot.slane %v1739_v30, 1  ;;  %v1746_v18 = vadd.f32 %v1745_v31, %v1744_v26  ;;  %v1751_v35 = vrot.slane %v1750_v32, 2  ;;  %v1757_v36 = vadd.f32 %v1756_v33, %v1755_v29 }
 0x758   :  { %v1747_v37 = vrot.slane %v1746_v18, 1  ;;  %v1752_v40 = vadd.f32 %v1751_v35, %v1750_v32  ;;  %v1758_v41 = vrot.slane %v1757_v36, 2  ;;  %v1741_v42 = vadd.f32 %v1740_v34, %v1739_v30 }
 0x75a   :  { %v1748_v43 = vadd.f32 %v1747_v37, %v1746_v18  ;;  %v1753_v44 = vrot.slane %v1752_v40, 1  ;;  %v1759_v45 = vadd.f32 %v1758_v41, %v1757_v36 }
 0x75c   :  { %v1766_v46 = vcombine.low %v1741_v42, %v1748_v43  ;;  %v1760_v48 = vrot.slane %v1759_v45, 1  ;;  %v1754_v49 = vadd.f32 %v1753_v44, %v1752_v40 }
 0x75e   :  { %v1761_v50 = vadd.f32 %v1760_v48, %v1759_v45  ;;  %v1773_v51 = vrot.slane %v1766_v46, %v1772_v3 }
 0x760   :  { %v1774_v10 = vcombine.low %v1754_v49, %v1761_v50 }
 0x762   :  { %v1781_v22 = vrot.slane %v1774_v10, %v1772_v3 }
 0x764   :  { %v1786_v53 = vrot.slane %v1781_v22, 7 }
 0x766   :  { %v1787_v54 = vsel %vm931_vm10, %v1786_v53, %v1773_v51 }
 0x767   :  { %v1789_v55 = vsel %vm1788_vm12, %v1786_v53, %v1787_v54 }
 0x768   :  { %v1791_v56 = vsel %vm1790_vm15, %v1786_v53, %v1789_v55 }
 0x769   :  { %v1793_v57 = vsel %vm1792_vm0, %v1786_v53, %v1791_v56 }
 0x76a   :  { %1798 = vst.msk [vmem:[#allocation25] sm:$0xf] %vm1797_vm1, %v1793_v57 }
 0x76b   :  { %2548 = shalt.err (!%p2545_p4)
}
 0x76c   :  { %s3407_s5 = sld [smem:[#allocation46_spill]] }
 0x772   :  { %s2549_s0 = scalar_lea.hbm %s3407_s5, 64 }
 0x773   :  { %p2550_p5 = scmp.ne.s32.totalorder %s3407_s5, %s2549_s0  ;;  %p2553_p6 = scmp.lt.u32.totalorder %s2549_s0, %s3407_s5 }
 0x775   :  { %p2555_p7 = pnand %p2553_p6, %p2550_p5 }
 0x777   :  { %2558 = shalt.err (!%p2555_p7)
}
 0x778   :  { %1808 = dma.vmem_to_hbm [thread:$0]  %s1806_s26, 64, %s3407_s5, [#allocation4]  }
 0x779   :  { %2575 = dma.done.wait [#allocation4], 64  }
 0x77a   :  { %2576 = vsyncadd [#allocation4], 4294967232 }
 0x77b   :  { %1812 = vsyncpa [#allocation3], 1 }
 0x77c   :  { %1813 = vsyncpa [#allocation6], 1 }
 0x77d   :  { %1814 = vsyncpa [#allocation9], 1 }
 0x77e   :  { %1815 = vsyncpa [#allocation12], 1 }
 0x77f   :  { %1816 = vsyncpa [#allocation15], 1 }
 0x780   :  { %1817 = vsyncpa [#allocation18], 1 }
 0x781   :  { %1818 = vsyncpa [#allocation21], 1 }
 0x782   :  { %1819 = vsyncpa [#allocation24], 1 }
 0x783   :  { %1820 = vsyncpa [#allocation4], 1 }

</bundles_post_ra>
